<compile_context>
chip_gen: v7x
topology: tpu7x:2x2x1
jax: 0.10.0
libtpu: 0.0.40
codegen_flags: <defaults>
</compile_context>

<pallas_src>
import jax
import jax.numpy as jnp
from jax.experimental import pallas as pl
from jax.experimental.pallas import tpu as pltpu


# ---------------------------------------------------------------------------
# Fused kernel.  Grid axis 0 streams the fc1 contraction dimension (K).
# ---------------------------------------------------------------------------
def discriminator_kernel(x_ref, w1_ref, b1_ref, w2_ref, b2_ref,
                         t_ref, wfx_ref, wfo_ref, bf_ref, out_ref, h1_acc):
    k = pl.program_id(0)

    @pl.when(k == 0)
    def _():
        h1_acc[...] = jnp.zeros_like(h1_acc)

    # fc1 partial product for this K tile (bf16 MXU, f32 accumulation).
    h1_acc[...] += jnp.dot(x_ref[...], w1_ref[...],
                           preferred_element_type=jnp.float32)

    @pl.when(k == pl.num_programs(0) - 1)
    def _():
        # fc1 bias + LeakyReLU(0.2)
        h1 = h1_acc[...] + b1_ref[...]
        h1 = jnp.where(h1 > 0, h1, 0.2 * h1)                         # (B, 512) f32

        # fc2 + LeakyReLU(0.2)
        h2 = jnp.dot(h1.astype(jnp.bfloat16), w2_ref[...],
                     preferred_element_type=jnp.float32) + b2_ref[...]
        h2 = jnp.where(h2 > 0, h2, 0.2 * h2)                         # (B, 256) f32
        h2_b = h2.astype(jnp.bfloat16)

        # MiniBatchDiscrimination (lane-padded to 128 kernels; pads are exact
        # zeros against zero rows of wf_o).  Elementwise/exp path kept in f32.
        m = jnp.dot(h2_b, t_ref[...], preferred_element_type=jnp.float32)  # (B, 128)
        diff = jnp.abs(m[:, None, :] - m[None, :, :])                      # (B, B, 128)
        # |m_i - m_j| is symmetric in (i, j): reducing over axis 0 is plain
        # VPU vreg accumulation (no cross-sublane XLU reduce) and is exact.
        o = jnp.sum(jnp.exp(-diff), axis=0)                                # (B, 128) f32

        # final Linear over cat([h2, o], dim=1), as an exact split matmul.
        y = (jnp.dot(h2_b, wfx_ref[...], preferred_element_type=jnp.float32)
             + jnp.dot(o.astype(jnp.bfloat16), wfo_ref[...],
                       preferred_element_type=jnp.float32)
             + bf_ref[...])                                                # (B, 1)
        out_ref[...] = y


def discriminator_forward(x_img, params, *, tk=512):
    """x_img: (B, C, H, W) float32. Returns (B, 1) float32."""
    w1, b1, w2, b2, T, wf, bf = params
    B = x_img.shape[0]
    D, H1 = w1.shape                      # (3072, 512)
    H2 = w2.shape[1]                      # 256
    assert D % tk == 0

    # Flattened input + weights in bf16 (halves HBM weight traffic); biases f32.
    x_flat = x_img.reshape(B, -1).astype(jnp.bfloat16)
    w1_bf = w1.astype(jnp.bfloat16)
    w2_bf = w2.astype(jnp.bfloat16)

    # Lane-pad the MBD kernel count 100 -> 128 with zeros (exact numerics).
    n_mbd = T.shape[1]
    n_pad = 128
    T_pad = jnp.zeros((H2, n_pad), jnp.float32).at[:, :n_mbd].set(T).astype(jnp.bfloat16)
    wf_x = wf[:H2, :].astype(jnp.bfloat16)                             # (256, 1)
    wf_o = jnp.zeros((n_pad, 1), jnp.float32).at[:n_mbd, :].set(wf[H2:, :]).astype(jnp.bfloat16)

    b1f = b1.astype(jnp.float32)
    b2f = b2.astype(jnp.float32)
    bff = bf.astype(jnp.float32)

    n_k = D // tk
    const = lambda k: (0, 0)   # resident-across-grid blocks (no re-DMA)

    out = pl.pallas_call(
        discriminator_kernel,
        out_shape=jax.ShapeDtypeStruct((B, 1), jnp.float32),
        grid_spec=pltpu.PrefetchScalarGridSpec(
            num_scalar_prefetch=0,
            grid=(n_k,),
            in_specs=[
                pl.BlockSpec((B, tk), lambda k: (0, k)),     # x   : K-tiled
                pl.BlockSpec((tk, H1), lambda k: (k, 0)),    # w1  : K-tiled (streamed)
                pl.BlockSpec((1, H1), const),                # b1
                pl.BlockSpec((H1, H2), const),               # w2
                pl.BlockSpec((1, H2), const),                # b2
                pl.BlockSpec((H2, n_pad), const),            # T (padded)
                pl.BlockSpec((H2, 1), const),                # wf_x
                pl.BlockSpec((n_pad, 1), const),             # wf_o (padded)
                pl.BlockSpec((1, 1), const),                 # bf
            ],
            out_specs=pl.BlockSpec((B, 1), const),
            scratch_shapes=[pltpu.VMEM((B, H1), jnp.float32)],   # fc1 accumulator
        ),
        compiler_params=pltpu.CompilerParams(
            dimension_semantics=("arbitrary",),
            vmem_limit_bytes=16 * 1024 * 1024,
        ),
    )(x_flat, w1_bf, b1f, w2_bf, b2f, T_pad, wf_x, wf_o, bff)
    return out


# ---------------------------------------------------------------------------
# Pure-JAX references.
#   reference_forward            : exact mirror of the PyTorch forward (f32).
#   reference_forward_quantized  : same math with bf16 quantization applied at
#                                  the same points as the kernel (tight check).
# ---------------------------------------------------------------------------
def reference_forward(x_img, params):
    w1, b1, w2, b2, T, wf, bf = params
    x = x_img.reshape(x_img.shape[0], -1)
    h = x @ w1 + b1
    h = jnp.where(h > 0, h, 0.2 * h)
    h = h @ w2 + b2
    h = jnp.where(h > 0, h, 0.2 * h)
    m = h @ T
    diff = jnp.abs(m[:, None, :] - m[None, :, :])
    o = jnp.exp(-diff).sum(axis=1)
    cat = jnp.concatenate([h, o], axis=1)
    return cat @ wf + bf


def reference_forward_quantized(x_img, params):
    w1, b1, w2, b2, T, wf, bf = params
    q = lambda a: a.astype(jnp.bfloat16).astype(jnp.float32)
    x = q(x_img.reshape(x_img.shape[0], -1))
    h1 = x @ q(w1) + b1
    h1 = q(jnp.where(h1 > 0, h1, 0.2 * h1))
    h2 = h1 @ q(w2) + b2
    h2 = q(jnp.where(h2 > 0, h2, 0.2 * h2))
    m = h2 @ q(T)
    diff = jnp.abs(m[:, None, :] - m[None, :, :])
    o = jnp.exp(-diff).sum(axis=1)
    return h2 @ q(wf[:256, :]) + q(o) @ q(wf[256:, :]) + bf


# ---------------------------------------------------------------------------
# Deterministic parameter construction (shapes from the module __init__).
# ---------------------------------------------------------------------------
def make_params(key, input_dim=3 * 32 * 32):
    ks = jax.random.split(key, 8)
    w1 = jax.random.normal(ks[0], (input_dim, 512), jnp.float32) * 0.02
    b1 = jax.random.normal(ks[1], (1, 512), jnp.float32) * 0.01
    w2 = jax.random.normal(ks[2], (512, 256), jnp.float32) * 0.02
    b2 = jax.random.normal(ks[3], (1, 256), jnp.float32) * 0.01
    T = jax.random.normal(ks[4], (256, 100), jnp.float32)          # torch.randn-like
    wf = jax.random.normal(ks[5], (256 + 100, 1), jnp.float32) * 0.02
    bf = jax.random.normal(ks[6], (1, 1), jnp.float32) * 0.01
    return (w1, b1, w2, b2, T, wf, bf)


if __name__ == "__main__":
    key = jax.random.PRNGKey(0)
    k_param, k_x = jax.random.split(key)

    params = make_params(k_param, input_dim=3 * 32 * 32)
    x_img = jax.random.normal(k_x, (2, 3, 32, 32), jnp.float32)     # batch=2, CIFAR-sized

    y_kernel = jax.block_until_ready(discriminator_forward(x_img, params))
    y_q = jax.block_until_ready(reference_forward_quantized(x_img, params))
    y_f32 = jax.block_until_ready(reference_forward(x_img, params))

    assert y_kernel.shape == (2, 1), y_kernel.shape
    # Tight check vs. a reference quantized at the same points as the kernel.
    assert jnp.allclose(y_kernel, y_q, rtol=2e-3, atol=2e-3), (y_kernel, y_q)
    # Loose sanity check vs. the exact f32 (PyTorch-equivalent) forward.
    assert jnp.allclose(y_kernel, y_f32, rtol=1e-1, atol=1e-1), (y_kernel, y_f32)
    print("KERNEL_OK")
</pallas_src>

<mosaic_0001>
module attributes {stable_mosaic.version = 11 : i64} {
  func.func @discriminator_kernel(%arg0: i32, %arg1: memref<2x512xbf16, #tpu.memory_space<vmem>>, %arg2: memref<512x512xbf16, #tpu.memory_space<vmem>>, %arg3: memref<1x512xf32, #tpu.memory_space<vmem>>, %arg4: memref<512x256xbf16, #tpu.memory_space<vmem>>, %arg5: memref<1x256xf32, #tpu.memory_space<vmem>>, %arg6: memref<256x128xbf16, #tpu.memory_space<vmem>>, %arg7: memref<256x1xbf16, #tpu.memory_space<vmem>>, %arg8: memref<128x1xbf16, #tpu.memory_space<vmem>>, %arg9: memref<1x1xf32, #tpu.memory_space<vmem>>, %arg10: memref<2x1xf32, #tpu.memory_space<vmem>>, %arg11: memref<2x512xf32, #tpu.memory_space<vmem>>) attributes {dimension_semantics = [#tpu.dimension_semantics<arbitrary>], iteration_bounds = array<i64: 6>, scalar_prefetch = 0 : i64, scratch_operands = 1 : i64, tpu.core_type = #tpu.core_type<tc>, window_params = [{transform_indices = @transform_0, window_bounds = array<i64: 2, 512>}, {transform_indices = @transform_1, window_bounds = array<i64: 512, 512>}, {pipeline_mode = #tpu.pipeline_mode<synchronous>, transform_indices = @transform_2, window_bounds = array<i64: 1, 512>}, {pipeline_mode = #tpu.pipeline_mode<synchronous>, transform_indices = @transform_3, window_bounds = array<i64: 512, 256>}, {pipeline_mode = #tpu.pipeline_mode<synchronous>, transform_indices = @transform_4, window_bounds = array<i64: 1, 256>}, {pipeline_mode = #tpu.pipeline_mode<synchronous>, transform_indices = @transform_5, window_bounds = array<i64: 256, 128>}, {pipeline_mode = #tpu.pipeline_mode<synchronous>, transform_indices = @transform_6, window_bounds = array<i64: 256, 1>}, {pipeline_mode = #tpu.pipeline_mode<synchronous>, transform_indices = @transform_7, window_bounds = array<i64: 128, 1>}, {pipeline_mode = #tpu.pipeline_mode<synchronous>, transform_indices = @transform_8, window_bounds = array<i64: 1, 1>}, {pipeline_mode = #tpu.pipeline_mode<synchronous>, transform_indices = @transform_9, window_bounds = array<i64: 2, 1>}]} {
    %c0_i32 = arith.constant 0 : i32
    %0 = arith.cmpi eq, %arg0, %c0_i32 : i32
    %1 = arith.extui %0 : i1 to i32
    %c0_i32_0 = arith.constant 0 : i32
    %2 = arith.cmpi ne, %1, %c0_i32_0 : i32
    scf.if %2 {
      %cst_9 = arith.constant 0.000000e+00 : f32
      %12 = vector.broadcast %cst_9 : f32 to vector<2x512xf32>
      %c0_10 = arith.constant 0 : index
      %c0_11 = arith.constant 0 : index
      %13 = vector.load %arg11[%c0_10, %c0_11] : memref<2x512xf32, #tpu.memory_space<vmem>>, vector<2x512xf32>
      tpu.vector_store %arg11[%c0_10, %c0_11], %12 {strides = array<i32>} : memref<2x512xf32, #tpu.memory_space<vmem>>, vector<2x512xf32>,
    } else {
    }
    %c0 = arith.constant 0 : index
    %c0_1 = arith.constant 0 : index
    %3 = vector.load %arg11[%c0, %c0_1] : memref<2x512xf32, #tpu.memory_space<vmem>>, vector<2x512xf32>
    %c0_2 = arith.constant 0 : index
    %c0_3 = arith.constant 0 : index
    %4 = vector.load %arg1[%c0_2, %c0_3] : memref<2x512xbf16, #tpu.memory_space<vmem>>, vector<2x512xbf16>
    %c0_4 = arith.constant 0 : index
    %c0_5 = arith.constant 0 : index
    %5 = vector.load %arg2[%c0_4, %c0_5] : memref<512x512xbf16, #tpu.memory_space<vmem>>, vector<512x512xbf16>
    %cst = arith.constant dense<0.000000e+00> : vector<2x512xf32>
    %6 = tpu.matmul %4, %5, %cst {dimension_numbers = #tpu.dot_dimension_numbers<[1], [0], [0], [1], [0, 0, 1, 1], [], []>} : vector<2x512xbf16>, vector<512x512xbf16>, vector<2x512xf32> -> vector<2x512xf32>
    %7 = arith.addf %3, %6 : vector<2x512xf32>
    %c0_6 = arith.constant 0 : index
    %c0_7 = arith.constant 0 : index
    %8 = vector.load %arg11[%c0_6, %c0_7] : memref<2x512xf32, #tpu.memory_space<vmem>>, vector<2x512xf32>
    tpu.vector_store %arg11[%c0_6, %c0_7], %7 {strides = array<i32>} : memref<2x512xf32, #tpu.memory_space<vmem>>, vector<2x512xf32>,
    %c5_i32 = arith.constant 5 : i32
    %9 = arith.cmpi eq, %arg0, %c5_i32 : i32
    %10 = arith.extui %9 : i1 to i32
    %c0_i32_8 = arith.constant 0 : i32
    %11 = arith.cmpi ne, %10, %c0_i32_8 : i32
    scf.if %11 {
      %c0_9 = arith.constant 0 : index
      %c0_10 = arith.constant 0 : index
      %12 = vector.load %arg11[%c0_9, %c0_10] : memref<2x512xf32, #tpu.memory_space<vmem>>, vector<2x512xf32>
      %c0_11 = arith.constant 0 : index
      %c0_12 = arith.constant 0 : index
      %13 = vector.load %arg3[%c0_11, %c0_12] : memref<1x512xf32, #tpu.memory_space<vmem>>, vector<1x512xf32>
      %14 = vector.broadcast %13 : vector<1x512xf32> to vector<2x512xf32>
      %15 = arith.addf %12, %14 : vector<2x512xf32>
      %cst_13 = arith.constant 0.000000e+00 : f32
      %16 = vector.broadcast %cst_13 : f32 to vector<2x512xf32>
      %17 = arith.cmpf ogt, %15, %16 : vector<2x512xf32>
      %cst_14 = arith.constant 2.000000e-01 : f32
      %18 = vector.broadcast %cst_14 : f32 to vector<2x512xf32>
      %19 = arith.mulf %18, %15 : vector<2x512xf32>
      %20 = arith.select %17, %15, %19 : vector<2x512xi1>, vector<2x512xf32>
      %21 = arith.truncf %20 : vector<2x512xf32> to vector<2x512xbf16>
      %c0_15 = arith.constant 0 : index
      %c0_16 = arith.constant 0 : index
      %22 = vector.load %arg4[%c0_15, %c0_16] : memref<512x256xbf16, #tpu.memory_space<vmem>>, vector<512x256xbf16>
      %cst_17 = arith.constant dense<0.000000e+00> : vector<2x256xf32>
      %23 = tpu.matmul %21, %22, %cst_17 {dimension_numbers = #tpu.dot_dimension_numbers<[1], [0], [0], [1], [0, 0, 1, 1], [], []>} : vector<2x512xbf16>, vector<512x256xbf16>, vector<2x256xf32> -> vector<2x256xf32>
      %c0_18 = arith.constant 0 : index
      %c0_19 = arith.constant 0 : index
      %24 = vector.load %arg5[%c0_18, %c0_19] : memref<1x256xf32, #tpu.memory_space<vmem>>, vector<1x256xf32>
      %25 = vector.broadcast %24 : vector<1x256xf32> to vector<2x256xf32>
      %26 = arith.addf %23, %25 : vector<2x256xf32>
      %cst_20 = arith.constant 0.000000e+00 : f32
      %27 = vector.broadcast %cst_20 : f32 to vector<2x256xf32>
      %28 = arith.cmpf ogt, %26, %27 : vector<2x256xf32>
      %cst_21 = arith.constant 2.000000e-01 : f32
      %29 = vector.broadcast %cst_21 : f32 to vector<2x256xf32>
      %30 = arith.mulf %29, %26 : vector<2x256xf32>
      %31 = arith.select %28, %26, %30 : vector<2x256xi1>, vector<2x256xf32>
      %32 = arith.truncf %31 : vector<2x256xf32> to vector<2x256xbf16>
      %c0_22 = arith.constant 0 : index
      %c0_23 = arith.constant 0 : index
      %33 = vector.load %arg6[%c0_22, %c0_23] : memref<256x128xbf16, #tpu.memory_space<vmem>>, vector<256x128xbf16>
      %cst_24 = arith.constant dense<0.000000e+00> : vector<2x128xf32>
      %34 = tpu.matmul %32, %33, %cst_24 {dimension_numbers = #tpu.dot_dimension_numbers<[1], [0], [0], [1], [0, 0, 1, 1], [], []>} : vector<2x256xbf16>, vector<256x128xbf16>, vector<2x128xf32> -> vector<2x128xf32>
      %35 = vector.shape_cast %34 : vector<2x128xf32> to vector<2x1x128xf32>
      %36 = vector.shape_cast %34 : vector<2x128xf32> to vector<1x2x128xf32>
      %37 = vector.broadcast %35 : vector<2x1x128xf32> to vector<2x2x128xf32>
      %38 = vector.broadcast %36 : vector<1x2x128xf32> to vector<2x2x128xf32>
      %39 = arith.subf %37, %38 : vector<2x2x128xf32>
      %40 = math.absf %39 : vector<2x2x128xf32>
      %cst_25 = arith.constant 0.000000e+00 : f32
      %41 = vector.broadcast %cst_25 : f32 to vector<2x2x128xf32>
      %42 = arith.subf %41, %40 : vector<2x2x128xf32>
      %43 = math.exp %42 : vector<2x2x128xf32>
      %cst_26 = arith.constant dense<0.000000e+00> : vector<2x128xf32>
      %44 = vector.multi_reduction <add>, %43, %cst_26 [0] : vector<2x2x128xf32> to vector<2x128xf32>
      %c0_27 = arith.constant 0 : index
      %c0_28 = arith.constant 0 : index
      %45 = vector.load %arg7[%c0_27, %c0_28] : memref<256x1xbf16, #tpu.memory_space<vmem>>, vector<256x1xbf16>
      %cst_29 = arith.constant dense<0.000000e+00> : vector<2x1xf32>
      %46 = tpu.matmul %32, %45, %cst_29 {dimension_numbers = #tpu.dot_dimension_numbers<[1], [0], [0], [1], [0, 0, 1, 1], [], []>} : vector<2x256xbf16>, vector<256x1xbf16>, vector<2x1xf32> -> vector<2x1xf32>
      %47 = arith.truncf %44 : vector<2x128xf32> to vector<2x128xbf16>
      %c0_30 = arith.constant 0 : index
      %c0_31 = arith.constant 0 : index
      %48 = vector.load %arg8[%c0_30, %c0_31] : memref<128x1xbf16, #tpu.memory_space<vmem>>, vector<128x1xbf16>
      %cst_32 = arith.constant dense<0.000000e+00> : vector<2x1xf32>
      %49 = tpu.matmul %47, %48, %cst_32 {dimension_numbers = #tpu.dot_dimension_numbers<[1], [0], [0], [1], [0, 0, 1, 1], [], []>} : vector<2x128xbf16>, vector<128x1xbf16>, vector<2x1xf32> -> vector<2x1xf32>
      %50 = arith.addf %46, %49 : vector<2x1xf32>
      %c0_33 = arith.constant 0 : index
      %c0_34 = arith.constant 0 : index
      %51 = vector.load %arg9[%c0_33, %c0_34] : memref<1x1xf32, #tpu.memory_space<vmem>>, vector<1x1xf32>
      %52 = vector.broadcast %51 : vector<1x1xf32> to vector<2x1xf32>
      %53 = arith.addf %50, %52 : vector<2x1xf32>
      %c0_35 = arith.constant 0 : index
      %c0_36 = arith.constant 0 : index
      %54 = vector.load %arg10[%c0_35, %c0_36] : memref<2x1xf32, #tpu.memory_space<vmem>>, vector<2x1xf32>
      tpu.vector_store %arg10[%c0_35, %c0_36], %53 {strides = array<i32>} : memref<2x1xf32, #tpu.memory_space<vmem>>, vector<2x1xf32>,
    } else {
    }
    return
  }
  func.func @transform_0(%arg0: i32) -> (i32, i32) {
    %c0_i32 = arith.constant 0 : i32
    %c0_i32_0 = arith.constant 0 : i32
    return %c0_i32, %arg0 : i32, i32
  }
  func.func @transform_1(%arg0: i32) -> (i32, i32) {
    %c0_i32 = arith.constant 0 : i32
    %c0_i32_0 = arith.constant 0 : i32
    return %arg0, %c0_i32 : i32, i32
  }
  func.func @transform_2(%arg0: i32) -> (i32, i32) {
    %c0_i32 = arith.constant 0 : i32
    %c0_i32_0 = arith.constant 0 : i32
    %c0_i32_1 = arith.constant 0 : i32
    return %c0_i32, %c0_i32_0 : i32, i32
  }
  func.func @transform_3(%arg0: i32) -> (i32, i32) {
    %c0_i32 = arith.constant 0 : i32
    %c0_i32_0 = arith.constant 0 : i32
    %c0_i32_1 = arith.constant 0 : i32
    return %c0_i32, %c0_i32_0 : i32, i32
  }
  func.func @transform_4(%arg0: i32) -> (i32, i32) {
    %c0_i32 = arith.constant 0 : i32
    %c0_i32_0 = arith.constant 0 : i32
    %c0_i32_1 = arith.constant 0 : i32
    return %c0_i32, %c0_i32_0 : i32, i32
  }
  func.func @transform_5(%arg0: i32) -> (i32, i32) {
    %c0_i32 = arith.constant 0 : i32
    %c0_i32_0 = arith.constant 0 : i32
    %c0_i32_1 = arith.constant 0 : i32
    return %c0_i32, %c0_i32_0 : i32, i32
  }
  func.func @transform_6(%arg0: i32) -> (i32, i32) {
    %c0_i32 = arith.constant 0 : i32
    %c0_i32_0 = arith.constant 0 : i32
    %c0_i32_1 = arith.constant 0 : i32
    return %c0_i32, %c0_i32_0 : i32, i32
  }
  func.func @transform_7(%arg0: i32) -> (i32, i32) {
    %c0_i32 = arith.constant 0 : i32
    %c0_i32_0 = arith.constant 0 : i32
    %c0_i32_1 = arith.constant 0 : i32
    return %c0_i32, %c0_i32_0 : i32, i32
  }
  func.func @transform_8(%arg0: i32) -> (i32, i32) {
    %c0_i32 = arith.constant 0 : i32
    %c0_i32_0 = arith.constant 0 : i32
    %c0_i32_1 = arith.constant 0 : i32
    return %c0_i32, %c0_i32_0 : i32, i32
  }
  func.func @transform_9(%arg0: i32) -> (i32, i32) {
    %c0_i32 = arith.constant 0 : i32
    %c0_i32_0 = arith.constant 0 : i32
    %c0_i32_1 = arith.constant 0 : i32
    return %c0_i32, %c0_i32_0 : i32, i32
  }
}

</mosaic_0001>

<bundles_post_ra>
// kernel: tpu_custom_call.1
= control target key start
LH: loop header
LB: loop body
LE: loop exit
PB: predicated region body
PF: predicated region fallthrough
CT: control target
= control target key end

     0   :  { %s4193_s0 = inlined_call_operand.hbm [shape: bf16[2,3072], index: 0, kind: input, shape index: {}]   ;;  %s4194_s1 = inlined_call_operand.hbm [shape: bf16[3072,512], index: 1, kind: input, shape index: {}]   ;;  %s4195_s2 = inlined_call_operand.hbm [shape: f32[1,512], index: 2, kind: input, shape index: {}]   ;;  %s4196_s3 = inlined_call_operand.hbm [shape: bf16[512,256], index: 3, kind: input, shape index: {}]   ;;  %s4197_s4 = inlined_call_operand.hbm [shape: f32[1,256], index: 4, kind: input, shape index: {}]   ;;  %s4198_s5 = inlined_call_operand.hbm [shape: bf16[256,128], index: 5, kind: input, shape index: {}]   ;;  %s4199_s6 = inlined_call_operand.vmem [shape: bf16[256,1], index: 6, kind: input, shape index: {}]   ;;  %s4200_s7 = inlined_call_operand.vmem [shape: bf16[128,1], index: 7, kind: input, shape index: {}]   ;;  %s4201_s8 = inlined_call_operand.<no memory space> [shape: f32[1,1], index: 8, kind: input, shape index: {}]   ;;  %s4202_s9 = inlined_call_operand.vmem [shape: f32[2,1], index: 9, kind: output, shape index: {}]  }
   0x1   :  { %4205 = sst [smem:[#allocation19_spill]] %s4193_s0  ;;  %v14_v0 = vstv %s4201_s8 }
   0x2   :  { %15 = vst [vmem:[#allocation3] sm:$0x1] %v14_v0 }
   0x3   :  { %16 = vsyncpa [#allocation5], 0 }
   0x4   :  { %18 = vsyncpa [#allocation5 + $0x1], 0 }
   0x5   :  { %19 = vsyncpa [#allocation7], 0 }
   0x6   :  { %21 = vsyncpa [#allocation7 + $0x1], 0 }
   0x7   :  { %22 = vsyncpa [#allocation10], 0 }
   0x8   :  { %23 = vsyncpa [#allocation13], 0  ;;  %s3654_s11 = smov 0   ;;  %s3656_s12 = smov 0  }
   0x9   :  { %s3658_s13 = smov 0   ;;  %s3660_s14 = smov 0  }
   0xa LB: > { %s3584_s8 = smov [#allocation8]   ;;  %s3675_s16 = sadd.s32 4294967295, %s3582_s14   ;;  %s3582_s14 = sphi %s3660_s14, %s4224_s14   ;;  %s3578_s13 = sphi %s3658_s13, %s4223_s13   ;;  %s3574_s12 = sphi %s3656_s12, %s4222_s12   ;;  %s3570_s11 = sphi %s3654_s11, %s4221_s11  }
   0xb   : > { %s267_s15 = sshll.u32 %s3584_s8, 4  ;;  %p2584_p0 = scmp.ge.s32.totalorder %s3582_s14, 1  ;;  %s268_s15 = int_to_ptr.vmem [resolvable:$true] %s267_s15 }
   0xc   : > { %p4203_p1 = scmp.eq.s32.totalorder %s3675_s16, 0  ;;  %p254_p2 = scmp.lt.s32.totalorder %s3582_s14, 7 }
   0xd   : > { %s3585_s18 = smov [#allocation9]   ;;  %s3586_s21 = smov [#allocation11]  }
   0xe   : > { %p3681_p4 = pnand %p2584_p0, %p254_p2  ;;  %s277_s19 = sshll.u32 %s3585_s18, 4  ;;  %s3687_s19 = int_to_ptr.vmem [resolvable:$true] %s277_s19 }
   0xf   : > { %s291_s22 = sshll.u32 %s3586_s21, 4  ;;  %s3360_s25 = scalar_lea.hbm %s4195_s2, 64  ;;  %s3695_s22 = int_to_ptr.vmem [resolvable:$true] %s291_s22 }
  0x10   : > { %s4206_s17 = scalar_select %p3681_p4, 1, 0 }
  0x11   : > { %p2952_p5 = pneg %p3681_p4  ;;  %p3361_p7 = scmp.ne.s32.totalorder %s4195_s2, %s3360_s25 }
  0x12   : > { %p3367_p11 = scmp.lt.u32.totalorder %s3360_s25, %s4195_s2 }
  0x13   : > { %p3691_p6 = pnand %p2952_p5, %p4203_p1 }
  0x15   : > { %p3705_p8 = pneg %p3691_p6 }
  0x17   : > { %p3363_p9 = pnand %p3705_p8, %p3361_p7 }
  0x19   : > { %p3364_p10 = pneg %p3363_p9 }
  0x1b   : > { %p3369_p12 = pnand %p3367_p11, %p3364_p10 }
  0x1d   : > { %3372 = shalt.err (!%p3369_p12)
}
  0x1e   : > { %s3373_s10 = scalar_lea.vmem %s268_s15, 64  ;;  %p3381_p5 = scmp.lt.s32.totalorder %s268_s15, %s268_s15 }
  0x1f   : > { %p3374_p13 = scmp.ne.s32.totalorder %s268_s15, %s3373_s10  ;;  %p3382_p3 = scmp.lt.s32.totalorder %s3373_s10, %s3373_s10 }
  0x21   : > { %p3376_p0 = pnand %p3374_p13, %p3705_p8  ;;  %p3383_p1 = por %p3382_p3, %p3381_p5 }
  0x23   : > { %p3377_p2 = pneg %p3376_p0 }
  0x25   : > { %p3384_p4 = pnand %p3383_p1, %p3377_p2 }
  0x27   : > { %3387 = shalt.err (!%p3384_p4)
}
  0x28   : > { %2955 = dma.hbm_to_vmem [thread:$0]  (!%p3691_p6), %s4195_s2, 64, %s268_s15, [#allocation7]  }
  0x29   : > { %s3388_s24 = scalar_lea.hbm %s4196_s3, 8192 }
  0x2a   : > { %p3389_p7 = scmp.ne.s32.totalorder %s4196_s3, %s3388_s24  ;;  %p3395_p1 = scmp.lt.u32.totalorder %s3388_s24, %s4196_s3 }
  0x2c   : > { %p3391_p9 = pnand %p3389_p7, %p3705_p8 }
  0x2e   : > { %p3392_p3 = pneg %p3391_p9 }
  0x30   : > { %p3397_p4 = pnand %p3395_p1, %p3392_p3 }
  0x32   : > { %3400 = shalt.err (!%p3397_p4)
}
  0x33   : > { %s3401_s15 = scalar_lea.vmem %s3687_s19, 8192  ;;  %p3409_p13 = scmp.lt.s32.totalorder %s3687_s19, %s3687_s19 }
  0x34   : > { %p3402_p10 = scmp.ne.s32.totalorder %s3687_s19, %s3401_s15  ;;  %p3410_p0 = scmp.lt.s32.totalorder %s3401_s15, %s3401_s15 }
  0x36   : > { %p3404_p11 = pnand %p3402_p10, %p3705_p8  ;;  %p3411_p2 = por %p3410_p0, %p3409_p13 }
  0x38   : > { %p3405_p12 = pneg %p3404_p11 }
  0x3a   : > { %p3412_p5 = pnand %p3411_p2, %p3405_p12 }
  0x3c   : > { %3415 = shalt.err (!%p3412_p5)
}
  0x3d   : > { %s3587_s30 = smov 128   ;;  %s3588_s10 = smov 8  }
  0x3e   : > { %2958 = dma.hbm_to_vmem [thread:$0]  (!%p3691_p6), %s4196_s3, 8192, %s3687_s19, [#allocation10], %s3587_s30, %s3587_s30, %s3588_s10  }
  0x3f   : > { %s3416_s24 = scalar_lea.hbm %s4197_s4, 32 }
  0x40   : > { %p3417_p7 = scmp.ne.s32.totalorder %s4197_s4, %s3416_s24  ;;  %p3423_p1 = scmp.lt.u32.totalorder %s3416_s24, %s4197_s4 }
  0x42   : > { %p3419_p9 = pnand %p3417_p7, %p3705_p8 }
  0x44   : > { %p3420_p3 = pneg %p3419_p9 }
  0x46   : > { %p3425_p4 = pnand %p3423_p1, %p3420_p3 }
  0x48   : > { %3428 = shalt.err (!%p3425_p4)
}
  0x49   : > { %s3429_s19 = scalar_lea.vmem %s3695_s22, 32  ;;  %p3437_p13 = scmp.lt.s32.totalorder %s3695_s22, %s3695_s22 }
  0x4a   : > { %p3430_p10 = scmp.ne.s32.totalorder %s3695_s22, %s3429_s19  ;;  %p3438_p0 = scmp.lt.s32.totalorder %s3429_s19, %s3429_s19 }
  0x4c   : > { %p3432_p11 = pnand %p3430_p10, %p3705_p8  ;;  %p3439_p2 = por %p3438_p0, %p3437_p13 }
  0x4e   : > { %p3433_p12 = pneg %p3432_p11 }
  0x50   : > { %p3440_p5 = pnand %p3439_p2, %p3433_p12 }
  0x52   : > { %3443 = shalt.err (!%p3440_p5)
}
  0x53   : > { %2961 = dma.hbm_to_vmem [thread:$0]  (!%p3691_p6), %s4197_s4, 32, %s3695_s22, [#allocation10]  }
  0x54   : > { %s3589_s10 = smov [#allocation12]   ;;  %s3444_s23 = scalar_lea.hbm %s4198_s5, 2048 }
  0x55   : > { %s301_s8 = sshll.u32 %s3589_s10, 4  ;;  %p3445_p7 = scmp.ne.s32.totalorder %s4198_s5, %s3444_s23  ;;  %s302_s8 = int_to_ptr.vmem [resolvable:$true] %s301_s8 }
  0x56   : > { %p3451_p1 = scmp.lt.u32.totalorder %s3444_s23, %s4198_s5 }
  0x57   : > { %p3447_p9 = pnand %p3445_p7, %p3705_p8 }
  0x59   : > { %p3448_p3 = pneg %p3447_p9 }
  0x5b   : > { %p3453_p4 = pnand %p3451_p1, %p3448_p3 }
  0x5d   : > { %3456 = shalt.err (!%p3453_p4)
}
  0x5e   : > { %s3457_s22 = scalar_lea.vmem %s302_s8, 2048  ;;  %p3465_p13 = scmp.lt.s32.totalorder %s302_s8, %s302_s8 }
  0x5f   : > { %p3458_p10 = scmp.ne.s32.totalorder %s302_s8, %s3457_s22  ;;  %p3466_p0 = scmp.lt.s32.totalorder %s3457_s22, %s3457_s22 }
  0x61   : > { %p3460_p11 = pnand %p3458_p10, %p3705_p8  ;;  %p3467_p2 = por %p3466_p0, %p3465_p13 }
  0x63   : > { %p3461_p12 = pneg %p3460_p11 }
  0x65   : > { %p3468_p5 = pnand %p3467_p2, %p3461_p12 }
  0x67   : > { %3471 = shalt.err (!%p3468_p5)
}
  0x68   : > { %s3590_s29 = smov 64   ;;  %s3591_s28 = smov 4  }
  0x69   : > { %2964 = dma.hbm_to_vmem [thread:$0]  (!%p3691_p6), %s4198_s5, 2048, %s302_s8, [#allocation13], %s3590_s29, %s3590_s29, %s3591_s28  }
  0x6a   : > { %s3786_s30 = sadd.s32 1, %s3582_s14   ;;  %s36_s10 = sadd.s32 1, %s3578_s13 }
  0x6b   : > { %s33_s18 = ssub.s32 %s3582_s14, %s3786_s30  ;;  %p43_p8 = scmp.ne.s32.totalorder %s3578_s13, %s3574_s12 }
  0x6c   : > { %p34_p7 = scmp.eq.s32.totalorder %s33_s18, 0  ;;  %p44_p9 = scmp.eq.s32.totalorder %s3582_s14, 0 }
  0x6d   : > { %p49_p3 = scmp.ne.s32.totalorder %s3574_s12, %s3570_s11  ;;  %p2976_p1 = scmp.lt.s32.totalorder %s3582_s14, 6 }
  0x6e   : > { %s3798_s21 = scalar_select %p34_p7, %s3578_s13, %s36_s10  }
  0x6f   : > { %p45_p4 = por %p44_p9, %p43_p8  ;;  %p4209_p10 = scmp.eq.s32.totalorder %s3675_s16, 0 }
  0x70   : > { %s3807_s23 = sand.u32 1, %s3578_s13   ;;  %s2842_s8 = sshll.u32 %s3582_s14, 6 }
  0x71   : > { %p3802_p11 = por %p4209_p10, %p49_p3  ;;  %s2590_s24 = sshll.u32 %s3807_s23, 2 }
  0x72   : > { %s4211_s0 = sld [smem:[#allocation19_spill]]  ;;  %s328_s27 = scalar_lea.vmem [#allocation4], %s2590_s24 }
  0x73   : > { %s336_s22 = sshll.u32 %s328_s27, 4  ;;  %p3816_p6 = pnand %p2976_p1, %p45_p4  ;;  %s3820_s22 = int_to_ptr.vmem [resolvable:$true] %s336_s22 }
  0x74   : > { %s2593_s28 = sshll.u32 %s3807_s23, 10  ;;  %s325_s19 = scalar_lea.sflag [#allocation5], %s3807_s23 }
  0x75   : > { %p3474_p13 = pneg %p3816_p6 }
  0x78   : > { %s3814_s11 = scalar_lea.hbm %s4211_s0, %s2842_s8  ;;  %s3477_s8 = scalar_lea.hbm %s4211_s0, 384 }
  0x79   : > { %s3472_s15 = scalar_lea.hbm %s3814_s11, 64  ;;  %p3478_p5 = scmp.lt.u32.totalorder %s3814_s11, %s4211_s0 }
  0x7a   : > { %p3473_p12 = scmp.ne.s32.totalorder %s3814_s11, %s3472_s15  ;;  %p3479_p8 = scmp.lt.u32.totalorder %s3477_s8, %s3472_s15 }
  0x7b   : > { %p3481_p9 = scmp.lt.u32.totalorder %s3472_s15, %s3814_s11 }
  0x7c   : > { %p3475_p0 = pnand %p3474_p13, %p3473_p12  ;;  %p3480_p7 = por %p3479_p8, %p3478_p5 }
  0x7e   : > { %p3476_p2 = pneg %p3475_p0  ;;  %p3482_p3 = por %p3481_p9, %p3480_p7 }
  0x80   : > { %p3483_p1 = pnand %p3482_p3, %p3476_p2 }
  0x82   : > { %3486 = shalt.err (!%p3483_p1)
}
  0x83   : > { %s3487_s26 = scalar_lea.vmem %s3820_s22, 64  ;;  %s3592_s27 = smov [#allocation4]  }
  0x84   : > { %p3488_p4 = scmp.ne.s32.totalorder %s3820_s22, %s3487_s26  ;;  %s3492_s10 = sshll.u32 %s3592_s27, 4  ;;  %s3493_s10 = int_to_ptr.vmem [resolvable:$false] %s3492_s10 }
  0x85   : > { %s3494_s18 = scalar_lea.vmem %s3493_s10, 128  ;;  %p3495_p0 = scmp.lt.s32.totalorder %s3820_s22, %s3493_s10 }
  0x86   : > { %p3490_p10 = pnand %p3488_p4, %p3474_p13  ;;  %p3496_p5 = scmp.lt.s32.totalorder %s3494_s18, %s3487_s26 }
  0x88   : > { %p3491_p12 = pneg %p3490_p10  ;;  %p3497_p8 = por %p3496_p5, %p3495_p0 }
  0x8a   : > { %p3498_p7 = pnand %p3497_p8, %p3491_p12 }
  0x8c   : > { %3501 = shalt.err (!%p3498_p7)
}
  0x8d   : > { %2968 = dma.hbm_to_vmem [thread:$0]  (!%p3816_p6), %s3814_s11, 64, %s3820_s22, %s325_s19  }
  0x8e   : > { %s347_s15 = scalar_lea.vmem [#allocation6], %s2593_s28  ;;  %s343_s24 = sand.u32 1, %s3582_s14  }
  0x8f   : > { %s355_s8 = sshll.u32 %s347_s15, 4  ;;  %s2844_s25 = sshll.u32 %s3582_s14, 14  ;;  %s3852_s8 = int_to_ptr.vmem [resolvable:$true] %s355_s8 }
  0x90   : > { %s3858_s10 = scalar_lea.hbm %s4194_s1, %s2844_s25  ;;  %s3860_s18 = scalar_lea.sflag [#allocation7], %s343_s24 }
  0x91   : > { %s3502_s0 = scalar_lea.hbm %s3858_s10, 16384  ;;  %s3507_s14 = scalar_lea.hbm %s4194_s1, 98304 }
  0x92   : > { %p3503_p2 = scmp.ne.s32.totalorder %s3858_s10, %s3502_s0  ;;  %p3508_p1 = scmp.lt.u32.totalorder %s3858_s10, %s4194_s1 }
  0x93   : > { %p3509_p4 = scmp.lt.u32.totalorder %s3507_s14, %s3502_s0  ;;  %p3511_p12 = scmp.lt.u32.totalorder %s3502_s0, %s3858_s10 }
  0x94   : > { %p3505_p9 = pnand %p3503_p2, %p3474_p13 }
  0x95   : > { %p3510_p10 = por %p3509_p4, %p3508_p1 }
  0x96   : > { %p3506_p3 = pneg %p3505_p9 }
  0x97   : > { %p3512_p0 = por %p3511_p12, %p3510_p10 }
  0x99   : > { %p3513_p5 = pnand %p3512_p0, %p3506_p3 }
  0x9b   : > { %3516 = shalt.err (!%p3513_p5)
}
  0x9c   : > { %s3517_s19 = scalar_lea.vmem %s3852_s8, 16384  ;;  %s3593_s15 = smov [#allocation6]  }
  0x9d   : > { %p3518_p8 = scmp.ne.s32.totalorder %s3852_s8, %s3517_s19  ;;  %s3522_s24 = sshll.u32 %s3593_s15, 4  ;;  %s3523_s24 = int_to_ptr.vmem [resolvable:$false] %s3522_s24 }
  0x9e   : > { %s3524_s25 = scalar_lea.vmem %s3523_s24, 32768  ;;  %p3525_p9 = scmp.lt.s32.totalorder %s3852_s8, %s3523_s24 }
  0x9f   : > { %p3520_p7 = pnand %p3518_p8, %p3474_p13  ;;  %p3526_p1 = scmp.lt.s32.totalorder %s3524_s25, %s3517_s19 }
  0xa1   : > { %p3521_p2 = pneg %p3520_p7  ;;  %p3527_p4 = por %p3526_p1, %p3525_p9 }
  0xa3   : > { %p3528_p10 = pnand %p3527_p4, %p3521_p2 }
  0xa5   : > { %3531 = shalt.err (!%p3528_p10)
}
  0xa6   : > { %s3594_s0 = smov 256   ;;  %s3595_s26 = smov 16  }
  0xa7   : > { %2971 = dma.hbm_to_vmem [thread:$0]  (!%p3816_p6), %s3858_s10, 16384, %s3852_s8, %s3860_s18, %s3594_s0, %s3594_s0, %s3595_s26  }
  0xa8   : > { %p4213_p13 = scmp.ne.s32.totalorder %s4206_s17, 0 }
  0xa9   : > { %s369_s27 = sand.u32 (!%p4213_p13), 1, %s3574_s12  }
  0xaa   : > { %367 = sbr.rel (%p4213_p13) target bundleno = 1354 (0x54a), region = 56  ;;  %s2598_s23 = sshll.u32 (!%p4213_p13), %s369_s27, 2 }
  0xab   : > { %s370_s11 = scalar_lea.sflag (!%p4213_p13), [#allocation5], %s369_s27  ;;  %s3889_s14 = scalar_lea.vmem (!%p4213_p13), [#allocation4], %s2598_s23 }
  0xb1   : > { %3549 = dma.done.wait (%p3802_p11), %s370_s11, 64  }
  0xb2   : > { %3551 = vsyncadd (%p3802_p11), %s370_s11, 4294967232  ;;  %s378_s22 = sand.u32 1, %s3675_s16   ;;  %s2599_s29 = sshll.u32 %s369_s27, 10 }
  0xb3   : > { %s379_s8 = scalar_lea.sflag [#allocation7], %s378_s22  ;;  %s3896_s10 = scalar_lea.vmem [#allocation6], %s2599_s29 }
  0xb4   : > { %3553 = dma.done.wait (%p3802_p11), %s379_s8, 16384  }
  0xb5   : > { %3555 = vsyncadd (%p3802_p11), %s379_s8, 4294950912  ;;  %p4214_p6 = scmp.eq.s32.totalorder %s3675_s16, 0 }
  0xb7   : > { %3557 = dma.done.wait (%p4214_p6), [#allocation7], 64   ;;  %p4215_p3 = pmov %p4214_p6 }
  0xb9   : > { %3559 = vsyncadd (%p4215_p3), [#allocation7], 4294967232  ;;  %p4216_p12 = pmov %p4215_p3 }
  0xba   : > { %p4217_p0 = pmov %p4215_p3 }
  0xbb   : > { %3561 = dma.done.wait (%p4216_p12), [#allocation10], 8224  }
  0xbc   : > { %3563 = vsyncadd (%p4217_p0), [#allocation10], 4294959072  ;;  %p4218_p5 = pmov %p4217_p0 }
  0xbd   : > { %p4219_p8 = pmov %p4217_p0 }
  0xbe   : > { %3565 = dma.done.wait (%p4218_p5), [#allocation13], 2048  }
  0xbf   : > { %3567 = vsyncadd (%p4219_p8), [#allocation13], 4294965248  ;;  %p4220_p11 = scmp.ne.s32.totalorder %s3675_s16, 0 }
  0xc0   : > { %v3596_v1 = vmov (!%p4220_p11), 0.0  }
  0xc1   : > { %439 = sbr.rel (%p4220_p11) target bundleno = 200 (0xc8), region = 84  ;;  %440 = vst [vmem:[#allocation2] sm:$0xff] (!%p4220_p11), %v3596_v1 }
  0xc8 PF: > { %v3028_v2 = vld [vmem:[%s3896_s10 + $0x4] ss:$16 sps:$4 sm:$0xff]   ;;  %v3030_v3 = vld [vmem:[%s3896_s10 + $0xc] ss:$16 sps:$4 sm:$0xff]   ;;  %v3032_v4 = vld [vmem:[%s3896_s10] ss:$16 sps:$4 sm:$0xff]   ;;  %v583_v42 = vlaneseq }
  0xc9   : > { %1240 = vmatprep.subr.bf16.mxu0 %v3028_v2  ;;  %v3033_v5 = vld [vmem:[%s3896_s10 + $0x8] ss:$16 sps:$4 sm:$0xff]   ;;  %1322 = vmatprep.subr.bf16.mxu1 %v3030_v3  ;;  %v3034_v6 = vld [vmem:[%s3896_s10 + $0x24] ss:$16 sps:$4 sm:$0xff]   ;;  %v3036_v7 = vld [vmem:[%s3896_s10 + $0x2c] ss:$16 sps:$4 sm:$0xff]  }
  0xca   : > { %1241 = vmatpush1.bf16.msra.mxu0 %v3032_v4  ;;  %1323 = vmatpush1.bf16.msra.mxu1 %v3033_v5  ;;  %v3038_v8 = vld [vmem:[%s3896_s10 + $0x20] ss:$16 sps:$4 sm:$0xff]   ;;  %v3039_v9 = vld [vmem:[%s3896_s10 + $0x28] ss:$16 sps:$4 sm:$0xff]   ;;  %v3040_v10 = vld [vmem:[%s3896_s10 + $0x44] ss:$16 sps:$4 sm:$0xff]  }
  0xcb   : > { %1242 = vmatprep.subr.bf16.mxu0 %v3034_v6  ;;  %1324 = vmatprep.subr.bf16.mxu1 %v3036_v7  ;;  %v3042_v11 = vld [vmem:[%s3896_s10 + $0x4c] ss:$16 sps:$4 sm:$0xff]   ;;  %v3044_v12 = vld [vmem:[%s3896_s10 + $0x40] ss:$16 sps:$4 sm:$0xff]   ;;  %v3045_v13 = vld [vmem:[%s3896_s10 + $0x48] ss:$16 sps:$4 sm:$0xff]  }
  0xcc   : > { %v3046_v14 = vld [vmem:[%s3896_s10 + $0x64] ss:$16 sps:$4 sm:$0xff]   ;;  %v3048_v15 = vld [vmem:[%s3896_s10 + $0x6c] ss:$16 sps:$4 sm:$0xff]   ;;  %v3050_v16 = vld [vmem:[%s3896_s10 + $0x60] ss:$16 sps:$4 sm:$0xff]  }
  0xcd   : > { %v3051_v17 = vld [vmem:[%s3896_s10 + $0x68] ss:$16 sps:$4 sm:$0xff]   ;;  %v3052_v18 = vld [vmem:[%s3896_s10 + $0x84] ss:$16 sps:$4 sm:$0xff]   ;;  %v3054_v19 = vld [vmem:[%s3896_s10 + $0x8c] ss:$16 sps:$4 sm:$0xff]  }
  0xce   : > { %1243 = vmatpush1.bf16.msra.mxu0 %v3038_v8  ;;  %1325 = vmatpush1.bf16.msra.mxu1 %v3039_v9  ;;  %v3056_v20 = vld [vmem:[%s3896_s10 + $0x80] ss:$16 sps:$4 sm:$0xff]   ;;  %v3057_v21 = vld [vmem:[%s3896_s10 + $0x88] ss:$16 sps:$4 sm:$0xff]   ;;  %v3058_v22 = vld [vmem:[%s3896_s10 + $0xa4] ss:$16 sps:$4 sm:$0xff]  }
  0xcf   : > { %1244 = vmatprep.subr.bf16.mxu0 %v3040_v10  ;;  %1326 = vmatprep.subr.bf16.mxu1 %v3042_v11  ;;  %v3060_v23 = vld [vmem:[%s3896_s10 + $0xac] ss:$16 sps:$4 sm:$0xff]   ;;  %v3062_v24 = vld [vmem:[%s3896_s10 + $0xa0] ss:$16 sps:$4 sm:$0xff]   ;;  %v3063_v25 = vld [vmem:[%s3896_s10 + $0xa8] ss:$16 sps:$4 sm:$0xff]  }
  0xd0   : > { %v3064_v26 = vld [vmem:[%s3896_s10 + $0xc4] ss:$16 sps:$4 sm:$0xff]   ;;  %v3066_v27 = vld [vmem:[%s3896_s10 + $0xcc] ss:$16 sps:$4 sm:$0xff]   ;;  %v3068_v28 = vld [vmem:[%s3896_s10 + $0xc0] ss:$16 sps:$4 sm:$0xff]  }
  0xd1   : > { %v3069_v29 = vld [vmem:[%s3896_s10 + $0xc8] ss:$16 sps:$4 sm:$0xff]   ;;  %v3070_v30 = vld [vmem:[%s3896_s10 + $0xe4] ss:$16 sps:$4 sm:$0xff]   ;;  %v3072_v31 = vld [vmem:[%s3896_s10 + $0xec] ss:$16 sps:$4 sm:$0xff]  }
  0xd2   : > { %1245 = vmatpush1.bf16.msra.mxu0 %v3044_v12  ;;  %1327 = vmatpush1.bf16.msra.mxu1 %v3045_v13  ;;  %v3074_v32 = vld [vmem:[%s3896_s10 + $0xe0] ss:$16 sps:$4 sm:$0xff]   ;;  %v3075_v33 = vld [vmem:[%s3896_s10 + $0xe8] ss:$16 sps:$4 sm:$0xff]   ;;  %v3076_v34 = vld [vmem:[%s3896_s10 + $0x104] ss:$16 sps:$4 sm:$0xff]  }
  0xd3   : > { %1246 = vmatprep.subr.bf16.mxu0 %v3046_v14  ;;  %1328 = vmatprep.subr.bf16.mxu1 %v3048_v15  ;;  %v3078_v35 = vld [vmem:[%s3896_s10 + $0x10c] ss:$16 sps:$4 sm:$0xff]   ;;  %v3080_v36 = vld [vmem:[%s3896_s10 + $0x100] ss:$16 sps:$4 sm:$0xff]   ;;  %v3081_v37 = vld [vmem:[%s3896_s10 + $0x108] ss:$16 sps:$4 sm:$0xff]  }
  0xd4   : > { %v3082_v38 = vld [vmem:[%s3896_s10 + $0x124] ss:$16 sps:$4 sm:$0xff]   ;;  %v3084_v39 = vld [vmem:[%s3896_s10 + $0x12c] ss:$16 sps:$4 sm:$0xff]   ;;  %v3597_v40 = vmov 1966171168  }
  0xd5   : > { %v581_v41 = vunpack.c.l.s4 %v3597_v40  ;;  %v3086_v43 = vld [vmem:[%s3896_s10 + $0x120] ss:$16 sps:$4 sm:$0xff]   ;;  %v3087_v44 = vld [vmem:[%s3896_s10 + $0x128] ss:$16 sps:$4 sm:$0xff]   ;;  %v3088_v45 = vld [vmem:[%s3896_s10 + $0x144] ss:$16 sps:$4 sm:$0xff]  }
  0xd6   : > { %1247 = vmatpush1.bf16.msra.mxu0 %v3050_v16  ;;  %1329 = vmatpush1.bf16.msra.mxu1 %v3051_v17  ;;  %v3090_v46 = vld [vmem:[%s3896_s10 + $0x14c] ss:$16 sps:$4 sm:$0xff]   ;;  %v3958_v48 = vshrl.u32 %v583_v42, 7  ;;  %v3092_v49 = vld [vmem:[%s3896_s10 + $0x140] ss:$16 sps:$4 sm:$0xff]   ;;  %p2734_p7 = scmp.ne.s32.totalorder %s3675_s16, 5 }
  0xd7   : > { %1248 = vmatprep.subr.bf16.mxu0 %v3052_v18  ;;  %1330 = vmatprep.subr.bf16.mxu1 %v3054_v19  ;;  %v582_v47 = vunpack.c.0.s8 %v581_v41  ;;  %v3093_v50 = vld [vmem:[%s3896_s10 + $0x148] ss:$16 sps:$4 sm:$0xff]   ;;  %v3094_v51 = vld [vmem:[%s3896_s10 + $0x164] ss:$16 sps:$4 sm:$0xff]   ;;  %v3096_v52 = vld [vmem:[%s3896_s10 + $0x16c] ss:$16 sps:$4 sm:$0xff]  }
  0xd8   : > { %v2605_v54 = vld.sshfl [vmem:[%s3889_s14] sm:$0x33 pattern:$0x75316420]  ;;  %v3098_v55 = vld [vmem:[%s3896_s10 + $0x160] ss:$16 sps:$4 sm:$0xff]  }
  0xd9   : > { %v3965_v53 = vsub.s32 %v582_v47, %v3958_v48  ;;  %v3099_v56 = vld [vmem:[%s3896_s10 + $0x168] ss:$16 sps:$4 sm:$0xff]   ;;  %v579_v57 = vcombine.high %v2605_v54, %v2605_v54  ;;  %v3100_v58 = vld [vmem:[%s3896_s10 + $0x184] ss:$16 sps:$4 sm:$0xff]   ;;  %v3102_v59 = vld [vmem:[%s3896_s10 + $0x18c] ss:$16 sps:$4 sm:$0xff]  }
  0xda   : > { %1249 = vmatpush1.bf16.msra.mxu0 %v3056_v20  ;;  %1331 = vmatpush1.bf16.msra.mxu1 %v3057_v21  ;;  %v3104_v61 = vld [vmem:[%s3896_s10 + $0x180] ss:$16 sps:$4 sm:$0xff]   ;;  %v3105_v62 = vld [vmem:[%s3896_s10 + $0x188] ss:$16 sps:$4 sm:$0xff]   ;;  %v3106_v63 = vld [vmem:[%s3896_s10 + $0x1a4] ss:$16 sps:$4 sm:$0xff]  }
  0xdb   : > { %1250 = vmatprep.subr.bf16.mxu0 %v3058_v22  ;;  %1332 = vmatprep.subr.bf16.mxu1 %v3060_v23  ;;  %v593_v60 = vrot.slane %v579_v57, %v3965_v53  ;;  %v3108_v0 = vld [vmem:[%s3896_s10 + $0x1ac] ss:$16 sps:$4 sm:$0xff]   ;;  %v3110_v1 = vld [vmem:[%s3896_s10 + $0x1a0] ss:$16 sps:$4 sm:$0xff]   ;;  %v3111_v2 = vld [vmem:[%s3896_s10 + $0x1a8] ss:$16 sps:$4 sm:$0xff]   ;;  %v3991_v14 = vrot.slane %v2605_v54, %v3965_v53 }
  0xdc   : > { %v3112_v3 = vld [vmem:[%s3896_s10 + $0x1c4] ss:$16 sps:$4 sm:$0xff]   ;;  %v3114_v4 = vld [vmem:[%s3896_s10 + $0x1cc] ss:$16 sps:$4 sm:$0xff]   ;;  %v3116_v5 = vld [vmem:[%s3896_s10 + $0x1c0] ss:$16 sps:$4 sm:$0xff]  }
  0xdd   : > { %1272 = vmatprep.mubr.bf16.mxu0 %v593_v60  ;;  %1354 = vmatprep.mubr.bf16.mxu1 %v593_v60  ;;  %v3117_v6 = vld [vmem:[%s3896_s10 + $0x1c8] ss:$16 sps:$4 sm:$0xff]   ;;  %v3118_v7 = vld [vmem:[%s3896_s10 + $0x1e4] ss:$16 sps:$4 sm:$0xff]   ;;  %v3120_v8 = vld [vmem:[%s3896_s10 + $0x1ec] ss:$16 sps:$4 sm:$0xff]   ;;  %v595_v18 = vcombine.high %v593_v60, %v593_v60 }
  0xde   : > { %1251 = vmatpush1.bf16.msra.mxu0 %v3062_v24  ;;  %1333 = vmatpush1.bf16.msra.mxu1 %v3063_v25  ;;  %v3122_v9 = vld [vmem:[%s3896_s10 + $0x1e0] ss:$16 sps:$4 sm:$0xff]   ;;  %v3123_v10 = vld [vmem:[%s3896_s10 + $0x1e8] ss:$16 sps:$4 sm:$0xff]   ;;  %v3126_v11 = vld [vmem:[%s3896_s10 + $0x204] ss:$16 sps:$4 sm:$0xff]  }
  0xdf   : > { %1252 = vmatprep.subr.bf16.mxu0 %v3064_v26  ;;  %1334 = vmatprep.subr.bf16.mxu1 %v3066_v27  ;;  %v3129_v12 = vld [vmem:[%s3896_s10 + $0x20c] ss:$16 sps:$4 sm:$0xff]   ;;  %v3124_v13 = vld [vmem:[%s3896_s10 + $0x200] ss:$16 sps:$4 sm:$0xff]   ;;  %v3127_v15 = vld [vmem:[%s3896_s10 + $0x208] ss:$16 sps:$4 sm:$0xff]  }
  0xe0   : > { %v3132_v16 = vld [vmem:[%s3896_s10 + $0x224] ss:$16 sps:$4 sm:$0xff]   ;;  %v3135_v17 = vld [vmem:[%s3896_s10 + $0x22c] ss:$16 sps:$4 sm:$0xff]   ;;  %v3130_v19 = vld [vmem:[%s3896_s10 + $0x220] ss:$16 sps:$4 sm:$0xff]  }
  0xe1   : > { %v3133_v20 = vld [vmem:[%s3896_s10 + $0x228] ss:$16 sps:$4 sm:$0xff]   ;;  %v3138_v21 = vld [vmem:[%s3896_s10 + $0x244] ss:$16 sps:$4 sm:$0xff]   ;;  %v3141_v22 = vld [vmem:[%s3896_s10 + $0x24c] ss:$16 sps:$4 sm:$0xff]  }
  0xe2   : > { %1253 = vmatpush1.bf16.msra.mxu0 %v3068_v28  ;;  %1335 = vmatpush1.bf16.msra.mxu1 %v3069_v29  ;;  %v3136_v23 = vld [vmem:[%s3896_s10 + $0x240] ss:$16 sps:$4 sm:$0xff]   ;;  %v3139_v24 = vld [vmem:[%s3896_s10 + $0x248] ss:$16 sps:$4 sm:$0xff]   ;;  %v3144_v25 = vld [vmem:[%s3896_s10 + $0x264] ss:$16 sps:$4 sm:$0xff]  }
  0xe3   : > { %1254 = vmatprep.subr.bf16.mxu0 %v3070_v30  ;;  %1336 = vmatprep.subr.bf16.mxu1 %v3072_v31  ;;  %v3147_v26 = vld [vmem:[%s3896_s10 + $0x26c] ss:$16 sps:$4 sm:$0xff]   ;;  %v3142_v27 = vld [vmem:[%s3896_s10 + $0x260] ss:$16 sps:$4 sm:$0xff]   ;;  %v3145_v28 = vld [vmem:[%s3896_s10 + $0x268] ss:$16 sps:$4 sm:$0xff]  }
  0xe4   : > { %v3150_v29 = vld [vmem:[%s3896_s10 + $0x284] ss:$16 sps:$4 sm:$0xff]   ;;  %v3153_v30 = vld [vmem:[%s3896_s10 + $0x28c] ss:$16 sps:$4 sm:$0xff]   ;;  %v3148_v31 = vld [vmem:[%s3896_s10 + $0x280] ss:$16 sps:$4 sm:$0xff]  }
  0xe5   : > { %v3163_v40 = vld [vmem:[%s3896_s10 + $0x2c8] ss:$16 sps:$4 sm:$0xff]   ;;  %v3168_v41 = vld [vmem:[%s3896_s10 + $0x2e4] ss:$16 sps:$4 sm:$0xff]   ;;  %v3171_v42 = vld [vmem:[%s3896_s10 + $0x2ec] ss:$16 sps:$4 sm:$0xff]  }
  0xe6   : > { %1255 = vmatpush1.bf16.msra.mxu0 %v3074_v32  ;;  %1337 = vmatpush1.bf16.msra.mxu1 %v3075_v33  ;;  %v3151_v32 = vld [vmem:[%s3896_s10 + $0x288] ss:$16 sps:$4 sm:$0xff]   ;;  %v3156_v33 = vld [vmem:[%s3896_s10 + $0x2a4] ss:$16 sps:$4 sm:$0xff]   ;;  %v3172_v47 = vld [vmem:[%s3896_s10 + $0x300] ss:$16 sps:$4 sm:$0xff]  }
  0xe7   : > { %1256 = vmatprep.subr.bf16.mxu0 %v3076_v34  ;;  %1338 = vmatprep.subr.bf16.mxu1 %v3078_v35  ;;  %v3159_v34 = vld [vmem:[%s3896_s10 + $0x2ac] ss:$16 sps:$4 sm:$0xff]   ;;  %v3154_v35 = vld [vmem:[%s3896_s10 + $0x2a0] ss:$16 sps:$4 sm:$0xff]   ;;  %v3181_v54 = vld [vmem:[%s3896_s10 + $0x328] ss:$16 sps:$4 sm:$0xff]  }
  0xe8   : > { %v3184_v57 = vld [vmem:[%s3896_s10 + $0x340] ss:$16 sps:$4 sm:$0xff]   ;;  %v3195_v60 = vld [vmem:[%s3896_s10 + $0x36c] ss:$16 sps:$4 sm:$0xff]   ;;  %vm3600_vm3 = vmmov (!%p2734_p7), 0   ;;  %vm2196_vm4 = vcmask (!%p2734_p7), 1041408  }
  0xe9   : > { %vm2481_vm5 = vcmask (!%p2734_p7), 1024  }
  0xea   : > { %1257 = vmatpush1.bf16.msra.mxu0 %v3080_v36  ;;  %1339 = vmatpush1.bf16.msra.mxu1 %v3081_v37  ;;  %v3157_v36 = vld [vmem:[%s3896_s10 + $0x2a8] ss:$16 sps:$4 sm:$0xff]   ;;  %v3162_v37 = vld [vmem:[%s3896_s10 + $0x2c4] ss:$16 sps:$4 sm:$0xff]  }
  0xeb   : > { %1258 = vmatprep.subr.bf16.mxu0 %v3082_v38  ;;  %1340 = vmatprep.subr.bf16.mxu1 %v3084_v39  ;;  %v3165_v38 = vld [vmem:[%s3896_s10 + $0x2cc] ss:$16 sps:$4 sm:$0xff]   ;;  %v3160_v39 = vld [vmem:[%s3896_s10 + $0x2c0] ss:$16 sps:$4 sm:$0xff]  }
  0xee   : > { %1259 = vmatpush1.bf16.msra.mxu0 %v3086_v43  ;;  %1341 = vmatpush1.bf16.msra.mxu1 %v3087_v44  ;;  %v3166_v43 = vld [vmem:[%s3896_s10 + $0x2e0] ss:$16 sps:$4 sm:$0xff]   ;;  %v3169_v44 = vld [vmem:[%s3896_s10 + $0x2e8] ss:$16 sps:$4 sm:$0xff]  }
  0xef   : > { %1260 = vmatprep.subr.bf16.mxu0 %v3088_v45  ;;  %1342 = vmatprep.subr.bf16.mxu1 %v3090_v46  ;;  %v3174_v45 = vld [vmem:[%s3896_s10 + $0x304] ss:$16 sps:$4 sm:$0xff]   ;;  %v3177_v46 = vld [vmem:[%s3896_s10 + $0x30c] ss:$16 sps:$4 sm:$0xff]  }
  0xf2   : > { %1261 = vmatpush1.bf16.msra.mxu0 %v3092_v49  ;;  %1343 = vmatpush1.bf16.msra.mxu1 %v3093_v50  ;;  %v3175_v49 = vld [vmem:[%s3896_s10 + $0x308] ss:$16 sps:$4 sm:$0xff]   ;;  %v3180_v50 = vld [vmem:[%s3896_s10 + $0x324] ss:$16 sps:$4 sm:$0xff]  }
  0xf3   : > { %1262 = vmatprep.subr.bf16.mxu0 %v3094_v51  ;;  %1344 = vmatprep.subr.bf16.mxu1 %v3096_v52  ;;  %v3183_v51 = vld [vmem:[%s3896_s10 + $0x32c] ss:$16 sps:$4 sm:$0xff]   ;;  %v3178_v52 = vld [vmem:[%s3896_s10 + $0x320] ss:$16 sps:$4 sm:$0xff]  }
  0xf6   : > { %1263 = vmatpush1.bf16.msra.mxu0 %v3098_v55  ;;  %1345 = vmatpush1.bf16.msra.mxu1 %v3099_v56  ;;  %v3186_v55 = vld [vmem:[%s3896_s10 + $0x344] ss:$16 sps:$4 sm:$0xff]   ;;  %v3189_v56 = vld [vmem:[%s3896_s10 + $0x34c] ss:$16 sps:$4 sm:$0xff]  }
  0xf7   : > { %1264 = vmatprep.subr.bf16.mxu0 %v3100_v58  ;;  %1346 = vmatprep.subr.bf16.mxu1 %v3102_v59  ;;  %v3187_v58 = vld [vmem:[%s3896_s10 + $0x348] ss:$16 sps:$4 sm:$0xff]   ;;  %v3192_v59 = vld [vmem:[%s3896_s10 + $0x364] ss:$16 sps:$4 sm:$0xff]  }
  0xfa   : > { %1265 = vmatpush1.bf16.msra.mxu0 %v3104_v61  ;;  %1347 = vmatpush1.bf16.msra.mxu1 %v3105_v62  ;;  %v3190_v61 = vld [vmem:[%s3896_s10 + $0x360] ss:$16 sps:$4 sm:$0xff]   ;;  %v3193_v62 = vld [vmem:[%s3896_s10 + $0x368] ss:$16 sps:$4 sm:$0xff]  }
  0xfb   : > { %1266 = vmatprep.subr.bf16.mxu0 %v3106_v63  ;;  %1348 = vmatprep.subr.bf16.mxu1 %v3108_v0  ;;  %v3198_v63 = vld [vmem:[%s3896_s10 + $0x384] ss:$16 sps:$4 sm:$0xff]   ;;  %v3201_v0 = vld [vmem:[%s3896_s10 + $0x38c] ss:$16 sps:$4 sm:$0xff]  }
  0xfe   : > { %1267 = vmatpush1.bf16.msra.mxu0 %v3110_v1  ;;  %1349 = vmatpush1.bf16.msra.mxu1 %v3111_v2  ;;  %v3196_v1 = vld [vmem:[%s3896_s10 + $0x380] ss:$16 sps:$4 sm:$0xff]   ;;  %v3199_v2 = vld [vmem:[%s3896_s10 + $0x388] ss:$16 sps:$4 sm:$0xff]  }
  0xff   : > { %1268 = vmatprep.subr.bf16.mxu0 %v3112_v3  ;;  %1350 = vmatprep.subr.bf16.mxu1 %v3114_v4  ;;  %v3204_v3 = vld [vmem:[%s3896_s10 + $0x3a4] ss:$16 sps:$4 sm:$0xff]   ;;  %v3207_v4 = vld [vmem:[%s3896_s10 + $0x3ac] ss:$16 sps:$4 sm:$0xff]  }
 0x102   : > { %1269 = vmatpush1.bf16.msra.mxu0 %v3116_v5  ;;  %1351 = vmatpush1.bf16.msra.mxu1 %v3117_v6  ;;  %v3202_v5 = vld [vmem:[%s3896_s10 + $0x3a0] ss:$16 sps:$4 sm:$0xff]   ;;  %v3205_v6 = vld [vmem:[%s3896_s10 + $0x3a8] ss:$16 sps:$4 sm:$0xff]  }
 0x103   : > { %1270 = vmatprep.subr.bf16.mxu0 %v3118_v7  ;;  %1352 = vmatprep.subr.bf16.mxu1 %v3120_v8  ;;  %v3210_v7 = vld [vmem:[%s3896_s10 + $0x3c4] ss:$16 sps:$4 sm:$0xff]   ;;  %v3213_v8 = vld [vmem:[%s3896_s10 + $0x3cc] ss:$16 sps:$4 sm:$0xff]  }
 0x106   : > { %1271 = vmatpush1.bf16.msra.mxu0 %v3122_v9  ;;  %1353 = vmatpush1.bf16.msra.mxu1 %v3123_v10  ;;  %v3208_v9 = vld [vmem:[%s3896_s10 + $0x3c0] ss:$16 sps:$4 sm:$0xff]   ;;  %v3211_v10 = vld [vmem:[%s3896_s10 + $0x3c8] ss:$16 sps:$4 sm:$0xff]  }
 0x107   : > { %1281 = vmatprep.subr.bf16.mxu0 %v3126_v11  ;;  %1363 = vmatprep.subr.bf16.mxu1 %v3129_v12  ;;  %v3216_v11 = vld [vmem:[%s3896_s10 + $0x3e4] ss:$16 sps:$4 sm:$0xff]   ;;  %v3219_v12 = vld [vmem:[%s3896_s10 + $0x3ec] ss:$16 sps:$4 sm:$0xff]  }
 0x109   : > { %1273 = vmatmul.mubr.bf16.vlgmr.msra.gmra.mrb[0].mxu0 %v3991_v14  ;;  %1355 = vmatmul.mubr.bf16.vlgmr.msra.gmra.mrb[0].mxu1 %v3991_v14 }
 0x10a   : > { %1282 = vmatpush1.bf16.msra.mxu0 %v3124_v13  ;;  %1364 = vmatpush1.bf16.msra.mxu1 %v3127_v15  ;;  %v3214_v13 = vld [vmem:[%s3896_s10 + $0x3e0] ss:$16 sps:$4 sm:$0xff]   ;;  %v3217_v15 = vld [vmem:[%s3896_s10 + $0x3e8] ss:$16 sps:$4 sm:$0xff]  }
 0x10b   : > { %1283 = vmatprep.subr.bf16.mxu0 %v3132_v16  ;;  %1365 = vmatprep.subr.bf16.mxu1 %v3135_v17  ;;  %v594_v16 = vcombine.high %v3991_v14, %v3991_v14  ;;  %v3598_v17 = vmov 1983009808  }
 0x10c   : > { %1313 = vmatprep.mubr.bf16.mxu0 %v595_v18  ;;  %1395 = vmatprep.mubr.bf16.mxu1 %v595_v18  ;;  %v1411_v18 = vunpack.c.l.s4 %v3598_v17  ;;  %v3253_v17 = vld [vmem:[#allocation9 + $0xb4] ss:$8 sps:$4 sm:$0xff] (!%p2734_p7)  }
 0x10e   : > { %1284 = vmatpush1.bf16.msra.mxu0 %v3130_v19  ;;  %1366 = vmatpush1.bf16.msra.mxu1 %v3133_v20  ;;  %v1412_v19 = vunpack.c.0.s8 %v1411_v18  ;;  %v3255_v18 = vld [vmem:[#allocation9 + $0xb0] ss:$8 sps:$4 sm:$0xff] (!%p2734_p7)  }
 0x10f   : > { %1285 = vmatprep.subr.bf16.mxu0 %v3138_v21  ;;  %1367 = vmatprep.subr.bf16.mxu1 %v3141_v22 }
 0x110   : > { %v4059_v22 = vsub.s32 %v1412_v19, %v3958_v48  ;;  %v3256_v19 = vld [vmem:[#allocation9 + $0xc4] ss:$8 sps:$4 sm:$0xff] (!%p2734_p7)  }
 0x112   : > { %1286 = vmatpush1.bf16.msra.mxu0 %v3136_v23  ;;  %1368 = vmatpush1.bf16.msra.mxu1 %v3139_v24 }
 0x113   : > { %1287 = vmatprep.subr.bf16.mxu0 %v3144_v25  ;;  %1369 = vmatprep.subr.bf16.mxu1 %v3147_v26 }
 0x116   : > { %1288 = vmatpush1.bf16.msra.mxu0 %v3142_v27  ;;  %1370 = vmatpush1.bf16.msra.mxu1 %v3145_v28 }
 0x117   : > { %1289 = vmatprep.subr.bf16.mxu0 %v3150_v29  ;;  %1371 = vmatprep.subr.bf16.mxu1 %v3153_v30 }
 0x11a   : > { %1290 = vmatpush1.bf16.msra.mxu0 %v3148_v31  ;;  %1372 = vmatpush1.bf16.msra.mxu1 %v3151_v32  ;;  %v441_v32 = vld [vmem:[#allocation2] sm:$0xff] }
 0x11b   : > { %1291 = vmatprep.subr.bf16.mxu0 %v3156_v33  ;;  %1373 = vmatprep.subr.bf16.mxu1 %v3159_v34 }
 0x11e   : > { %1292 = vmatpush1.bf16.msra.mxu0 %v3154_v35  ;;  %1374 = vmatpush1.bf16.msra.mxu1 %v3157_v36  ;;  %v3220_v35 = vld [vmem:[#allocation9 + $0x4] ss:$8 sps:$4 sm:$0xff] (!%p2734_p7)   ;;  %v3222_v36 = vld [vmem:[#allocation9] ss:$8 sps:$4 sm:$0xff] (!%p2734_p7)  }
 0x11f   : > { %1293 = vmatprep.subr.bf16.mxu0 %v3162_v37  ;;  %1375 = vmatprep.subr.bf16.mxu1 %v3165_v38  ;;  %v3223_v37 = vld [vmem:[#allocation9 + $0x14] ss:$8 sps:$4 sm:$0xff] (!%p2734_p7)   ;;  %v3225_v38 = vld [vmem:[#allocation9 + $0x10] ss:$8 sps:$4 sm:$0xff] (!%p2734_p7)  }
 0x122   : > { %1294 = vmatpush1.bf16.msra.mxu0 %v3160_v39  ;;  %1376 = vmatpush1.bf16.msra.mxu1 %v3163_v40  ;;  %v3226_v39 = vld [vmem:[#allocation9 + $0x24] ss:$8 sps:$4 sm:$0xff] (!%p2734_p7)   ;;  %v3228_v40 = vld [vmem:[#allocation9 + $0x20] ss:$8 sps:$4 sm:$0xff] (!%p2734_p7)  }
 0x123   : > { %1295 = vmatprep.subr.bf16.mxu0 %v3168_v41  ;;  %1377 = vmatprep.subr.bf16.mxu1 %v3171_v42  ;;  %v3229_v41 = vld [vmem:[#allocation9 + $0x34] ss:$8 sps:$4 sm:$0xff] (!%p2734_p7)   ;;  %v3231_v42 = vld [vmem:[#allocation9 + $0x30] ss:$8 sps:$4 sm:$0xff] (!%p2734_p7)  }
 0x126   : > { %1296 = vmatpush1.bf16.msra.mxu0 %v3166_v43  ;;  %1378 = vmatpush1.bf16.msra.mxu1 %v3169_v44  ;;  %v3232_v43 = vld [vmem:[#allocation9 + $0x44] ss:$8 sps:$4 sm:$0xff] (!%p2734_p7)   ;;  %v3234_v44 = vld [vmem:[#allocation9 + $0x40] ss:$8 sps:$4 sm:$0xff] (!%p2734_p7)  }
 0x127   : > { %1297 = vmatprep.subr.bf16.mxu0 %v3174_v45  ;;  %1379 = vmatprep.subr.bf16.mxu1 %v3177_v46  ;;  %v3235_v45 = vld [vmem:[#allocation9 + $0x54] ss:$8 sps:$4 sm:$0xff] (!%p2734_p7)   ;;  %v4065_v46 = vsub.s32 (!%p2734_p7), 0, %v3958_v48 }
 0x12a   : > { %1298 = vmatpush1.bf16.msra.mxu0 %v3172_v47  ;;  %1380 = vmatpush1.bf16.msra.mxu1 %v3175_v49  ;;  %v1441_v47 = vsub.s32 (!%p2734_p7), 1, %v3958_v48  ;;  %v1445_v49 = vsub.s32 (!%p2734_p7), 2, %v3958_v48 }
 0x12b   : > { %1299 = vmatprep.subr.bf16.mxu0 %v3180_v50  ;;  %1381 = vmatprep.subr.bf16.mxu1 %v3183_v51  ;;  %v1449_v50 = vsub.s32 (!%p2734_p7), 3, %v3958_v48  ;;  %v3237_v51 = vld [vmem:[#allocation9 + $0x50] ss:$8 sps:$4 sm:$0xff] (!%p2734_p7)  }
 0x12c   : > { %v3332_v48 = vld [vmem:[%s4200_s7] sm:$0xff] (!%p2734_p7)  }
 0x12e   : > { %1300 = vmatpush1.bf16.msra.mxu0 %v3178_v52  ;;  %1382 = vmatpush1.bf16.msra.mxu1 %v3181_v54  ;;  %v3238_v52 = vld [vmem:[#allocation9 + $0x64] ss:$8 sps:$4 sm:$0xff] (!%p2734_p7)   ;;  %v1433_v54 = vld [vmem:[#allocation8] sm:$0xf] (!%p2734_p7) }
 0x12f   : > { %1301 = vmatprep.subr.bf16.mxu0 %v3186_v55  ;;  %1383 = vmatprep.subr.bf16.mxu1 %v3189_v56  ;;  %v1438_v55 = vrot.slane (!%p2734_p7), %v1433_v54, %v4065_v46  ;;  %v1442_v56 = vrot.slane (!%p2734_p7), %v1433_v54, %v1441_v47 }
 0x132   : > { %1302 = vmatpush1.bf16.msra.mxu0 %v3184_v57  ;;  %1384 = vmatpush1.bf16.msra.mxu1 %v3187_v58  ;;  %v1446_v57 = vrot.slane (!%p2734_p7), %v1433_v54, %v1445_v49  ;;  %v1450_v58 = vrot.slane (!%p2734_p7), %v1433_v54, %v1449_v50  ;;  %v3271_v49 = vld [vmem:[#allocation9 + $0x110] ss:$8 sps:$4 sm:$0xff] (!%p2734_p7)   ;;  %v3276_v50 = vld [vmem:[#allocation9 + $0x124] ss:$8 sps:$4 sm:$0xff] (!%p2734_p7)  }
 0x133   : > { %1303 = vmatprep.subr.bf16.mxu0 %v3192_v59  ;;  %1385 = vmatprep.subr.bf16.mxu1 %v3195_v60  ;;  %v3240_v59 = vld [vmem:[#allocation9 + $0x60] ss:$8 sps:$4 sm:$0xff] (!%p2734_p7)   ;;  %v3241_v60 = vld [vmem:[#allocation9 + $0x74] ss:$8 sps:$4 sm:$0xff] (!%p2734_p7)   ;;  %v3277_v54 = vld [vmem:[#allocation9 + $0x130] ss:$8 sps:$4 sm:$0xff] (!%p2734_p7)  }
 0x136   : > { %1304 = vmatpush1.bf16.msra.mxu0 %v3190_v61  ;;  %1386 = vmatpush1.bf16.msra.mxu1 %v3193_v62  ;;  %v1451_v61 = vcombine.low (!%p2734_p7), %v1438_v55, %v1442_v56  ;;  %v1452_v62 = vcombine.low (!%p2734_p7), %v1446_v57, %v1450_v58  ;;  %v3282_v55 = vld [vmem:[#allocation9 + $0x144] ss:$8 sps:$4 sm:$0xff] (!%p2734_p7)   ;;  %v3280_v56 = vld [vmem:[#allocation9 + $0x140] ss:$8 sps:$4 sm:$0xff] (!%p2734_p7)   ;;  %v3285_v57 = vld [vmem:[#allocation9 + $0x154] ss:$8 sps:$4 sm:$0xff] (!%p2734_p7)  }
 0x137   : > { %1305 = vmatprep.subr.bf16.mxu0 %v3198_v63  ;;  %1387 = vmatprep.subr.bf16.mxu1 %v3201_v0  ;;  %v3243_v63 = vld [vmem:[#allocation9 + $0x70] ss:$8 sps:$4 sm:$0xff] (!%p2734_p7)  }
 0x138   : > { %v1459_v0 = vrot.slane (!%p2734_p7), %v1451_v61, %v4059_v22  ;;  %v3283_v58 = vld [vmem:[#allocation9 + $0x150] ss:$8 sps:$4 sm:$0xff] (!%p2734_p7)   ;;  %v3291_v61 = vld [vmem:[#allocation9 + $0x174] ss:$8 sps:$4 sm:$0xff] (!%p2734_p7)  }
 0x13a   : > { %1306 = vmatpush1.bf16.msra.mxu0 %v3196_v1  ;;  %1388 = vmatpush1.bf16.msra.mxu1 %v3199_v2  ;;  %v1466_v1 = vrot.slane (!%p2734_p7), %v1452_v62, %v4059_v22  ;;  %v3289_v62 = vld [vmem:[#allocation9 + $0x170] ss:$8 sps:$4 sm:$0xff] (!%p2734_p7)  }
 0x13b   : > { %1307 = vmatprep.subr.bf16.mxu0 %v3204_v3  ;;  %1389 = vmatprep.subr.bf16.mxu1 %v3207_v4  ;;  %v3244_v3 = vld [vmem:[#allocation9 + $0x84] ss:$8 sps:$4 sm:$0xff] (!%p2734_p7)  }
 0x13c   : > { %v1467_v4 = vcombine.low (!%p2734_p7), %v1459_v0, %v1466_v1  ;;  %v3292_v0 = vld [vmem:[#allocation9 + $0x180] ss:$8 sps:$4 sm:$0xff] (!%p2734_p7)   ;;  %v3297_v1 = vld [vmem:[#allocation9 + $0x194] ss:$8 sps:$4 sm:$0xff] (!%p2734_p7)  }
 0x13e   : > { %1308 = vmatpush1.bf16.msra.mxu0 %v3202_v5  ;;  %1390 = vmatpush1.bf16.msra.mxu1 %v3205_v6  ;;  %v3246_v6 = vld [vmem:[#allocation9 + $0x80] ss:$8 sps:$4 sm:$0xff] (!%p2734_p7)  }
 0x13f   : > { %1309 = vmatprep.subr.bf16.mxu0 %v3210_v7  ;;  %1391 = vmatprep.subr.bf16.mxu1 %v3213_v8  ;;  %v3247_v7 = vld [vmem:[#allocation9 + $0x94] ss:$8 sps:$4 sm:$0xff] (!%p2734_p7)  }
 0x142   : > { %1310 = vmatpush1.bf16.msra.mxu0 %v3208_v9  ;;  %1392 = vmatpush1.bf16.msra.mxu1 %v3211_v10  ;;  %v3249_v10 = vld [vmem:[#allocation9 + $0x90] ss:$8 sps:$4 sm:$0xff] (!%p2734_p7)  }
 0x143   : > { %1311 = vmatprep.subr.bf16.mxu0 %v3216_v11  ;;  %1393 = vmatprep.subr.bf16.mxu1 %v3219_v12  ;;  %v3250_v12 = vld [vmem:[#allocation9 + $0xa4] ss:$8 sps:$4 sm:$0xff] (!%p2734_p7)  }
 0x146   : > { %1312 = vmatpush1.bf16.msra.mxu0 %v3214_v13  ;;  %1394 = vmatpush1.bf16.msra.mxu1 %v3217_v15  ;;  %v3252_v15 = vld [vmem:[#allocation9 + $0xa0] ss:$8 sps:$4 sm:$0xff] (!%p2734_p7)  }
 0x147   : > { %1895 = vmatprep.subr.bf16.mxu0 (!%p2734_p7), %v3220_v35  ;;  %v3323_v35 = vld [vmem:[#allocation12 + $0x18] sm:$0xff] (!%p2734_p7)  }
 0x149   : > { %1314 = vmatmul.mubr.bf16.vlgmr.msra.gmra.mrb[0].mxu0 %v594_v16  ;;  %1396 = vmatmul.mubr.bf16.vlgmr.msra.gmra.mrb[0].mxu1 %v594_v16 }
 0x14a   : > { %1896 = vmatpush1.bf16.msra.mxu0 (!%p2734_p7), %v3222_v36  ;;  %v3324_v36 = vld [vmem:[#allocation12 + $0x60] sm:$0xff] (!%p2734_p7)  }
 0x14b   : > { %1897 = vmatprep.subr.bf16.mxu0 (!%p2734_p7), %v3223_v37  ;;  %v3267_v37 = vld [vmem:[#allocation9 + $0xf0] ss:$8 sps:$4 sm:$0xff] (!%p2734_p7)  }
 0x14e   : > { %1898 = vmatpush1.bf16.msra.mxu0 (!%p2734_p7), %v3225_v38  ;;  %v3325_v38 = vld [vmem:[#allocation12 + $0x20] sm:$0xff] (!%p2734_p7)  }
 0x14f   : > { %1899 = vmatprep.subr.bf16.mxu0 (!%p2734_p7), %v3226_v39  ;;  %v3270_v39 = vld [vmem:[#allocation9 + $0x104] ss:$8 sps:$4 sm:$0xff] (!%p2734_p7)  }
 0x152   : > { %1900 = vmatpush1.bf16.msra.mxu0 (!%p2734_p7), %v3228_v40  ;;  %v3326_v40 = vld [vmem:[#allocation12 + $0x68] sm:$0xff] (!%p2734_p7)  }
 0x153   : > { %1901 = vmatprep.subr.bf16.mxu0 (!%p2734_p7), %v3229_v41 }
 0x156   : > { %1902 = vmatpush1.bf16.msra.mxu0 (!%p2734_p7), %v3231_v42  ;;  %v3268_v42 = vld [vmem:[#allocation9 + $0x100] ss:$8 sps:$4 sm:$0xff] (!%p2734_p7)  }
 0x157   : > { %1903 = vmatprep.subr.bf16.mxu0 (!%p2734_p7), %v3232_v43  ;;  %v3273_v43 = vld [vmem:[#allocation9 + $0x114] ss:$8 sps:$4 sm:$0xff] (!%p2734_p7)  }
 0x15a   : > { %1904 = vmatpush1.bf16.msra.mxu0 (!%p2734_p7), %v3234_v44  ;;  %v3327_v44 = vld [vmem:[#allocation12 + $0x28] sm:$0xff] (!%p2734_p7)  }
 0x15b   : > { %1905 = vmatprep.subr.bf16.mxu0 (!%p2734_p7), %v3235_v45 }
 0x15e   : > { %1906 = vmatpush1.bf16.msra.mxu0 (!%p2734_p7), %v3237_v51  ;;  %v3274_v51 = vld [vmem:[#allocation9 + $0x120] ss:$8 sps:$4 sm:$0xff] (!%p2734_p7)  }
 0x15f   : > { %1907 = vmatprep.subr.bf16.mxu0 (!%p2734_p7), %v3238_v52  ;;  %v3279_v52 = vld [vmem:[#allocation9 + $0x134] ss:$8 sps:$4 sm:$0xff] (!%p2734_p7)  }
 0x162   : > { %1908 = vmatpush1.bf16.msra.mxu0 (!%p2734_p7), %v3240_v59  ;;  %v3288_v59 = vld [vmem:[#allocation9 + $0x164] ss:$8 sps:$4 sm:$0xff] (!%p2734_p7)  }
 0x163   : > { %1909 = vmatprep.subr.bf16.mxu0 (!%p2734_p7), %v3241_v60  ;;  %v3286_v60 = vld [vmem:[#allocation9 + $0x160] ss:$8 sps:$4 sm:$0xff] (!%p2734_p7)  }
 0x166   : > { %1910 = vmatpush1.bf16.msra.mxu0 (!%p2734_p7), %v3243_v63  ;;  %v3294_v63 = vld [vmem:[#allocation9 + $0x184] ss:$8 sps:$4 sm:$0xff] (!%p2734_p7)  }
 0x167   : > { %1911 = vmatprep.subr.bf16.mxu0 (!%p2734_p7), %v3244_v3  ;;  %v3300_v3 = vld [vmem:[#allocation9 + $0x1a4] ss:$8 sps:$4 sm:$0xff] (!%p2734_p7)  }
 0x16a   : > { %1912 = vmatpush1.bf16.msra.mxu0 (!%p2734_p7), %v3246_v6  ;;  %v3301_v6 = vld [vmem:[#allocation9 + $0x1b0] ss:$8 sps:$4 sm:$0xff] (!%p2734_p7)  }
 0x16b   : > { %1913 = vmatprep.subr.bf16.mxu0 (!%p2734_p7), %v3247_v7  ;;  %v3306_v7 = vld [vmem:[#allocation9 + $0x1c4] ss:$8 sps:$4 sm:$0xff] (!%p2734_p7)  }
 0x16e   : > { %1914 = vmatpush1.bf16.msra.mxu0 (!%p2734_p7), %v3249_v10  ;;  %v3307_v10 = vld [vmem:[#allocation9 + $0x1d0] ss:$8 sps:$4 sm:$0xff] (!%p2734_p7)  }
 0x16f   : > { %1915 = vmatprep.subr.bf16.mxu0 (!%p2734_p7), %v3250_v12  ;;  %v3310_v12 = vld [vmem:[#allocation9 + $0x1e0] ss:$8 sps:$4 sm:$0xff] (!%p2734_p7)  }
 0x172   : > { %1916 = vmatpush1.bf16.msra.mxu0 (!%p2734_p7), %v3252_v15  ;;  %v3313_v15 = vld [vmem:[#allocation9 + $0x1f0] ss:$8 sps:$4 sm:$0xff] (!%p2734_p7)  }
 0x173   : > { %1917 = vmatprep.subr.bf16.mxu0 (!%p2734_p7), %v3253_v17  ;;  %v3328_v17 = vld [vmem:[#allocation12 + $0x70] sm:$0xff] (!%p2734_p7)  }
 0x176   : > { %1918 = vmatpush1.bf16.msra.mxu0 (!%p2734_p7), %v3255_v18  ;;  %v3329_v18 = vld [vmem:[#allocation12 + $0x30] sm:$0xff] (!%p2734_p7)  }
 0x177   : > { %1919 = vmatprep.subr.bf16.mxu0 (!%p2734_p7), %v3256_v19  ;;  %v3330_v19 = vld [vmem:[#allocation12 + $0x78] sm:$0xff] (!%p2734_p7)  }
 0x21c   : > { %v1315_v20 = vpop.f32.mrb[0].mxu0  ;;  %v1397_v21 = vpop.f32.mrb[0].mxu1 }
 0x21d   : > { %v1317_v23 = vpop.f32.mrb[1].mxu0  ;;  %v1399_v24 = vpop.f32.mrb[1].mxu1 }
 0x21e   : > { %v1408_v25 = vcombine.low %v1315_v20, %v1317_v23  ;;  %v1409_v26 = vcombine.low %v1397_v21, %v1399_v24  ;;  %v1319_v27 = vpop.f32.mrb[2].mxu0  ;;  %v1401_v28 = vpop.f32.mrb[2].mxu1  ;;  %v3316_v20 = vld [vmem:[#allocation12 + $0x40] sm:$0xff] (!%p2734_p7)   ;;  %v3259_v24 = vld [vmem:[#allocation9 + $0xd4] ss:$8 sps:$4 sm:$0xff] (!%p2734_p7)  }
 0x21f   : > { %v1320_v29 = vpop.f32.mrb[3].mxu0  ;;  %v1402_v14 = vpop.f32.mrb[3].mxu1  ;;  %v3258_v21 = vld [vmem:[#allocation9 + $0xc0] ss:$8 sps:$4 sm:$0xff] (!%p2734_p7)   ;;  %2845 = vmatprep.subr.bf16.mxu1 (!%p2734_p7), %v3316_v20  ;;  %v3320_v27 = vld [vmem:[#allocation12 + $0x50] sm:$0xff] (!%p2734_p7)  }
 0x220   : > { %v1416_v30 = vrot.slane %v1408_v25, %v4059_v22  ;;  %v1423_v31 = vrot.slane %v1409_v26, %v4059_v22  ;;  %1431 = sbr.rel (%p2734_p7) target bundleno = 1354 (0x54a), region = 88  ;;  %v3317_v23 = vld [vmem:[#allocation12] sm:$0xff] (!%p2734_p7)   ;;  %v3318_v25 = vld [vmem:[#allocation12 + $0x48] sm:$0xff] (!%p2734_p7)   ;;  %1920 = vmatpush1.bf16.msra.mxu0 (!%p2734_p7), %v3258_v21  ;;  %v3331_v20 = vld [vmem:[#allocation12 + $0x38] sm:$0xff] (!%p2734_p7)  }
 0x221   : > { %2846 = vmatpush3.bf16.msra.mxu1 (!%p2734_p7), %v3317_v23  ;;  %v3319_v26 = vld [vmem:[#allocation12 + $0x8] sm:$0xff] (!%p2734_p7)   ;;  %1921 = vmatprep.subr.bf16.mxu0 (!%p2734_p7), %v3259_v24  ;;  %v1563_v21 = vld [vmem:[#allocation11] sm:$0x3] (!%p2734_p7) }
 0x222   : > { %v1424_v33 = vcombine.low %v1416_v30, %v1423_v31  ;;  %2847 = vmatprep.subr.bf16.mxu1 (!%p2734_p7), %v3318_v25  ;;  %v3261_v28 = vld [vmem:[#allocation9 + $0xd0] ss:$8 sps:$4 sm:$0xff] (!%p2734_p7)   ;;  %v3262_v29 = vld [vmem:[#allocation9 + $0xe4] ss:$8 sps:$4 sm:$0xff] (!%p2734_p7)   ;;  %v1568_v23 = vrot.slane (!%p2734_p7), %v1563_v21, %v4065_v46  ;;  %v1572_v24 = vrot.slane (!%p2734_p7), %v1563_v21, %v1441_v47  ;;  %v3599_v47 = vmov (!%p2734_p7), 0.0  }
 0x223   : > { %v3321_v30 = vld [vmem:[#allocation12 + $0x10] sm:$0xff] (!%p2734_p7)   ;;  %v3322_v31 = vld [vmem:[#allocation12 + $0x58] sm:$0xff] (!%p2734_p7)   ;;  %v3355_v21 = vld [vmem:[%s4199_s6 + $0x38] sm:$0xff] (!%p2734_p7)  }
 0x224   : > { %v1426_v34 = vadd.f32 %v1424_v33, %v441_v32  ;;  %v3264_v32 = vld [vmem:[#allocation9 + $0xe0] ss:$8 sps:$4 sm:$0xff] (!%p2734_p7)   ;;  %v3265_v33 = vld [vmem:[#allocation9 + $0xf4] ss:$8 sps:$4 sm:$0xff] (!%p2734_p7)   ;;  %1922 = vmatpush1.bf16.msra.mxu0 (!%p2734_p7), %v3261_v28 }
 0x225   : > { %2848 = vmatpush3.bf16.msra.mxu1 (!%p2734_p7), %v3319_v26  ;;  %1923 = vmatprep.subr.bf16.mxu0 (!%p2734_p7), %v3262_v29 }
 0x226   : > { %1427 = vst [vmem:[#allocation2] sm:$0xff] %v1426_v34  ;;  %2849 = vmatprep.subr.bf16.mxu1 (!%p2734_p7), %v3320_v27 }
 0x228   : > { %1924 = vmatpush1.bf16.msra.mxu0 %v3264_v32 }
 0x229   : > { %2850 = vmatpush3.bf16.msra.mxu1 %v3321_v30  ;;  %1925 = vmatprep.subr.bf16.mxu0 %v3265_v33 }
 0x22a   : > { %2851 = vmatprep.subr.bf16.mxu1 %v3322_v31 }
 0x22c   : > { %1926 = vmatpush1.bf16.msra.mxu0 %v3267_v37  ;;  %v3334_v37 = vld [vmem:[%s4200_s7 + $0x10] sm:$0xff]  }
 0x22d   : > { %v1432_v2 = vld [vmem:[#allocation2] sm:$0xff]  ;;  %2852 = vmatpush3.bf16.msra.mxu1 %v3323_v35  ;;  %1936 = vmatprep.subr.bf16.mxu0 %v3270_v39 }
 0x22e   : > { %v1469_v5 = vadd.f32 %v1467_v4, %v1432_v2  ;;  %2853 = vmatprep.subr.bf16.mxu1 %v3324_v36  ;;  %v3295_v2 = vld [vmem:[#allocation9 + $0x190] ss:$8 sps:$4 sm:$0xff]   ;;  %v3298_v4 = vld [vmem:[#allocation9 + $0x1a0] ss:$8 sps:$4 sm:$0xff]  }
 0x22f   : > { %v3333_v36 = vld [vmem:[%s4200_s7 + $0x8] sm:$0xff]   ;;  %v3336_v39 = vld [vmem:[%s4200_s7 + $0x20] sm:$0xff]  }
 0x230   : > { %vm1470_vm0 = vcmp.gt.f32.partialorder %v1469_v5, 0.0  ;;  %v1471_v8 = vmul.f32 0.2, %v1469_v5 }
 0x231   : > { %2854 = vmatpush3.bf16.msra.mxu1 %v3325_v38  ;;  %v3335_v38 = vld [vmem:[%s4200_s7 + $0x18] sm:$0xff]  }
 0x232   : > { %v1472_v9 = vsel %vm1470_vm0, %v1469_v5, %v1471_v8  ;;  %2855 = vmatprep.subr.bf16.mxu1 %v3326_v40  ;;  %v3303_v5 = vld [vmem:[#allocation9 + $0x1b4] ss:$8 sps:$4 sm:$0xff]   ;;  %v3304_v8 = vld [vmem:[#allocation9 + $0x1c0] ss:$8 sps:$4 sm:$0xff]  }
 0x233   : > { %v4076_v11 = vrot.slane %v1472_v9, %v4059_v22  ;;  %v1474_v14 = vcombine.high %v1472_v9, %v1472_v9  ;;  %v3309_v9 = vld [vmem:[#allocation9 + $0x1d4] ss:$8 sps:$4 sm:$0xff]  }
 0x234   : > { %v3337_v40 = vld [vmem:[%s4200_s7 + $0x28] sm:$0xff]  }
 0x235   : > { %v1489_v13 = vcombine.high %v4076_v11, %v4076_v11  ;;  %v4081_v34 = vrot.slane %v1474_v14, %v4059_v22  ;;  %v1495_v22 = vpack.c.bf16 %v4076_v11, %v4076_v11  ;;  %2856 = vmatpush3.bf16.msra.mxu1 %v3327_v44  ;;  %v3312_v11 = vld [vmem:[#allocation9 + $0x1e4] ss:$8 sps:$4 sm:$0xff]  }
 0x236   : > { %2857 = vmatprep.subr.bf16.mxu1 %v3328_v17  ;;  %v3351_v17 = vld [vmem:[%s4199_s6 + $0x28] sm:$0xff]  }
 0x237   : > { %v1496_v16 = vpack.c.bf16 %v1489_v13, %v1489_v13  ;;  %v1490_v41 = vcombine.high %v4081_v34, %v4081_v34  ;;  %v3315_v13 = vld [vmem:[#allocation9 + $0x1f4] ss:$8 sps:$4 sm:$0xff]  }
 0x239   : > { %1927 = vmatprep.mubr.bf16.mxu0 %v1496_v16  ;;  %v1498_v45 = vpack.c.bf16 %v1490_v41, %v1490_v41  ;;  %v1497_v16 = vpack.c.bf16 %v4081_v34, %v4081_v34  ;;  %2858 = vmatpush3.bf16.msra.mxu1 %v3329_v18  ;;  %v3338_v41 = vld [vmem:[%s4200_s7 + $0x30] sm:$0xff]  }
 0x23a   : > { %1928 = vmatmul.mubr.bf16.vlgmr.msra.gmra.mrb[0].mxu0 %v1495_v22  ;;  %2859 = vmatprep.subr.bf16.mxu1 %v3330_v19  ;;  %v3340_v22 = vld [vmem:[%s4199_s6 + $0x40] sm:$0xff]   ;;  %v3352_v18 = vld [vmem:[%s4199_s6 + $0x70] sm:$0xff]  }
 0x23b   : > { %1937 = vmatpush1.bf16.msra.mxu0 %v3268_v42  ;;  %1968 = vmatprep.mubr.bf16.mxu0 %v1498_v45  ;;  %v3339_v42 = vld [vmem:[%s4200_s7 + $0x38] sm:$0xff]   ;;  %v3353_v19 = vld [vmem:[%s4199_s6 + $0x30] sm:$0xff]  }
 0x23c   : > { %1938 = vmatprep.subr.bf16.mxu0 %v3273_v43 }
 0x23d   : > { %2860 = vmatpush3.bf16.msra.mxu1 %v3331_v20  ;;  %v3354_v20 = vld [vmem:[%s4199_s6 + $0x78] sm:$0xff]  }
 0x23e   : > { %2898 = vmatprep.subr.bf16.mxu1 %v3599_v47 }
 0x23f   : > { %1939 = vmatpush1.bf16.msra.mxu0 %v3271_v49 }
 0x240   : > { %1940 = vmatprep.subr.bf16.mxu0 %v3276_v50 }
 0x243   : > { %1941 = vmatpush1.bf16.msra.mxu0 %v3274_v51 }
 0x244   : > { %1942 = vmatprep.subr.bf16.mxu0 %v3279_v52 }
 0x247   : > { %1943 = vmatpush1.bf16.msra.mxu0 %v3277_v54 }
 0x248   : > { %1944 = vmatprep.subr.bf16.mxu0 %v3282_v55 }
 0x24b   : > { %1945 = vmatpush1.bf16.msra.mxu0 %v3280_v56 }
 0x24c   : > { %1946 = vmatprep.subr.bf16.mxu0 %v3285_v57 }
 0x24f   : > { %1947 = vmatpush1.bf16.msra.mxu0 %v3283_v58 }
 0x250   : > { %1948 = vmatprep.subr.bf16.mxu0 %v3288_v59 }
 0x253   : > { %1949 = vmatpush1.bf16.msra.mxu0 %v3286_v60 }
 0x254   : > { %1950 = vmatprep.subr.bf16.mxu0 %v3291_v61 }
 0x257   : > { %1951 = vmatpush1.bf16.msra.mxu0 %v3289_v62 }
 0x258   : > { %1952 = vmatprep.subr.bf16.mxu0 %v3294_v63 }
 0x25b   : > { %1953 = vmatpush1.bf16.msra.mxu0 %v3292_v0 }
 0x25c   : > { %1954 = vmatprep.subr.bf16.mxu0 %v3297_v1 }
 0x25f   : > { %1955 = vmatpush1.bf16.msra.mxu0 %v3295_v2 }
 0x260   : > { %1956 = vmatprep.subr.bf16.mxu0 %v3300_v3 }
 0x263   : > { %1957 = vmatpush1.bf16.msra.mxu0 %v3298_v4 }
 0x264   : > { %1958 = vmatprep.subr.bf16.mxu0 %v3303_v5 }
 0x267   : > { %1959 = vmatpush1.bf16.msra.mxu0 %v3301_v6 }
 0x268   : > { %1960 = vmatprep.subr.bf16.mxu0 %v3306_v7  ;;  %v3342_v7 = vld [vmem:[%s4199_s6 + $0x48] sm:$0xff]  }
 0x26b   : > { %1961 = vmatpush1.bf16.msra.mxu0 %v3304_v8  ;;  %v3343_v8 = vld [vmem:[%s4199_s6 + $0x8] sm:$0xff]  }
 0x26c   : > { %1962 = vmatprep.subr.bf16.mxu0 %v3309_v9  ;;  %v3344_v9 = vld [vmem:[%s4199_s6 + $0x50] sm:$0xff]  }
 0x26f   : > { %1963 = vmatpush1.bf16.msra.mxu0 %v3307_v10  ;;  %v3345_v10 = vld [vmem:[%s4199_s6 + $0x10] sm:$0xff]  }
 0x270   : > { %1964 = vmatprep.subr.bf16.mxu0 %v3312_v11  ;;  %v3346_v11 = vld [vmem:[%s4199_s6 + $0x58] sm:$0xff]  }
 0x273   : > { %1965 = vmatpush1.bf16.msra.mxu0 %v3310_v12  ;;  %v3347_v12 = vld [vmem:[%s4199_s6 + $0x18] sm:$0xff]  }
 0x274   : > { %1966 = vmatprep.subr.bf16.mxu0 %v3315_v13  ;;  %v3348_v13 = vld [vmem:[%s4199_s6 + $0x60] sm:$0xff]  }
 0x277   : > { %1967 = vmatpush1.bf16.msra.mxu0 %v3313_v15  ;;  %v3349_v15 = vld [vmem:[%s4199_s6 + $0x20] sm:$0xff]  }
 0x27a   : > { %1969 = vmatmul.mubr.bf16.vlgmr.msra.gmra.mrb[0].mxu0 %v1497_v16  ;;  %v3350_v16 = vld [vmem:[%s4199_s6 + $0x68] sm:$0xff]  }
 0x34d   : > { %v1970_v25 = vpop.f32.mrb[0].mxu0 }
 0x34e   : > { %v2926_v26 = vadd.f32 %v1970_v25, %v1568_v23  ;;  %v1972_v27 = vpop.f32.mrb[1].mxu0 }
 0x34f   : > { %v2927_v28 = vadd.f32 %v1972_v27, %v1572_v24  ;;  %v1974_v29 = vpop.f32.mrb[2].mxu0 }
 0x350   : > { %vm1977_vm1 = vcmp.gt.f32.partialorder %v2926_v26, 0.0  ;;  %v1979_v14 = vmul.f32 0.2, %v2926_v26  ;;  %v1975_v30 = vpop.f32.mrb[3].mxu0 }
 0x351   : > { %v1980_v31 = vmul.f32 0.2, %v2927_v28  ;;  %vm1978_vm2 = vcmp.gt.f32.partialorder %v2927_v28, 0.0  ;;  %v2839_v30 = vld [vmem:[#allocation3] ss:$0 sm:$0xff] }
 0x352   : > { %v1981_v32 = vsel %vm1977_vm1, %v2926_v26, %v1979_v14 }
 0x353   : > { %v1982_v33 = vsel %vm1978_vm2, %v2927_v28, %v1980_v31  ;;  %v4094_v35 = vpack.c.bf16 %v1981_v32, %v1981_v32 }
 0x354   : > { %v4092_v34 = vpack.c.bf16 %v1982_v33, %v1982_v33 }
 0x356   : > { %2145 = vmatprep.mubr.bf16.mxu1 %v4092_v34 }
 0x357   : > { %2146 = vmatmul.mubr.bf16.vlgmr.msra.gmra.mrb[0].mxu1 %v4094_v35 }
 0x358   : > { %2899 = vmatpush3.bf16.msra.mxu1 %v3332_v48  ;;  %2914 = vmatprep.mubr.msk.bf16.mxu1 %vm3600_vm3, %v3599_v47 }
 0x359   : > { %2900 = vmatprep.subr.bf16.mxu1 %v3599_v47 }
 0x35c   : > { %2901 = vmatpush3.bf16.msra.mxu1 %v3333_v36 }
 0x35d   : > { %2902 = vmatprep.subr.bf16.mxu1 %v3599_v47 }
 0x360   : > { %2903 = vmatpush3.bf16.msra.mxu1 %v3334_v37 }
 0x361   : > { %2904 = vmatprep.subr.bf16.mxu1 %v3599_v47 }
 0x364   : > { %2905 = vmatpush3.bf16.msra.mxu1 %v3335_v38 }
 0x365   : > { %2906 = vmatprep.subr.bf16.mxu1 %v3599_v47 }
 0x368   : > { %2907 = vmatpush3.bf16.msra.mxu1 %v3336_v39 }
 0x369   : > { %2908 = vmatprep.subr.bf16.mxu1 %v3599_v47 }
 0x36c   : > { %2909 = vmatpush3.bf16.msra.mxu1 %v3337_v40 }
 0x36d   : > { %2910 = vmatprep.subr.bf16.mxu1 %v3599_v47 }
 0x370   : > { %2911 = vmatpush3.bf16.msra.mxu1 %v3338_v41 }
 0x371   : > { %2912 = vmatprep.subr.bf16.mxu1 %v3599_v47 }
 0x374   : > { %2913 = vmatpush3.bf16.msra.mxu1 %v3339_v42 }
 0x375   : > { %2876 = vmatprep.subr.bf16.mxu1 %v3340_v22 }
 0x42a   : > { %v2861_v43 = vpop.f32.mrb[0].mxu1 }
 0x42b   : > { %v2862_v44 = vpop.f32.mrb[1].mxu1 }
 0x42c   : > { %v2863_v45 = vadd.f32 %v2862_v44, %v2861_v43  ;;  %v2864_v49 = vpop.f32.mrb[2].mxu1 }
 0x42d   : > { %v2865_v50 = vpop.f32.mrb[3].mxu1 }
 0x42e   : > { %v2160_v51 = vrot.slane %v2863_v45, %v3965_v53 }
 0x430   : > { %v2161_v52 = vcombine.high %v2160_v51, %v2160_v51  ;;  %v2168_v54 = vrot.slane %v2160_v51, %v3965_v53 }
 0x432   : > { %v2175_v55 = vrot.slane %v2161_v52, %v3965_v53  ;;  %v2179_v56 = vrot.slane %v2168_v54, %v4065_v46 }
 0x434   : > { %v2183_v57 = vrot.slane %v2175_v55, %v4065_v46  ;;  %v2186_v58 = vsub.f32 %v2179_v56, %v2863_v45  ;;  %v3341_v46 = vld [vmem:[%s4199_s6] sm:$0xff]  }
 0x436   : > { %v2187_v59 = vsub.f32 %v2183_v57, %v2863_v45  ;;  %v2188_v60 = vand.u32 2147483647, %v2186_v58 }
 0x438   : > { %v2189_v61 = vand.u32 2147483647, %v2187_v59  ;;  %v2190_v62 = vsub.f32 0.0, %v2188_v60 }
 0x43a   : > { %v2191_v63 = vsub.f32 0.0, %v2189_v61  ;;  %v2192_v0 = vmul.f32 1.442695, %v2190_v62 }
 0x43c   : > { %3356 = vpow2.f32 %v2192_v0  ;;  %v2194_v1 = vmul.f32 1.442695, %v2191_v63 }
 0x43e   : > { %3358 = vpow2.f32 %v2194_v1 }
 0x446   : > { %v3357_v2 = vpop.eup %3356 }
 0x447   : > { %v2197_v4 = vsel %vm2196_vm4, %v3357_v2, 0.0 }
 0x448   : > { %v3359_v3 = vpop.eup %3358 }
 0x449   : > { %v2198_v5 = vsel %vm2196_vm4, %v3359_v3, 0.0 }
 0x44a   : > { %v2199_v53 = vadd.f32 %v2198_v5, %v2197_v4 }
 0x44c   : > { %v2232_v6 = vpack.c.bf16 %v2199_v53, %v2199_v53 }
 0x44e   : > { %2915 = vmatmul.mubr.bf16.vlgmr.msra.gmra.mrb[4].mxu1 %v2232_v6 }
 0x44f   : > { %2877 = vmatpush3.bf16.msra.mxu1 %v3341_v46  ;;  %2465 = vmatprep.mubr.bf16.mxu1 %v4092_v34 }
 0x450   : > { %2878 = vmatprep.subr.bf16.mxu1 %v3342_v7 }
 0x453   : > { %2879 = vmatpush3.bf16.msra.mxu1 %v3343_v8 }
 0x454   : > { %2880 = vmatprep.subr.bf16.mxu1 %v3344_v9 }
 0x457   : > { %2881 = vmatpush3.bf16.msra.mxu1 %v3345_v10 }
 0x458   : > { %2882 = vmatprep.subr.bf16.mxu1 %v3346_v11 }
 0x45b   : > { %2883 = vmatpush3.bf16.msra.mxu1 %v3347_v12 }
 0x45c   : > { %2884 = vmatprep.subr.bf16.mxu1 %v3348_v13 }
 0x45f   : > { %2885 = vmatpush3.bf16.msra.mxu1 %v3349_v15 }
 0x460   : > { %2886 = vmatprep.subr.bf16.mxu1 %v3350_v16 }
 0x463   : > { %2887 = vmatpush3.bf16.msra.mxu1 %v3351_v17 }
 0x464   : > { %2888 = vmatprep.subr.bf16.mxu1 %v3352_v18 }
 0x467   : > { %2889 = vmatpush3.bf16.msra.mxu1 %v3353_v19 }
 0x468   : > { %2890 = vmatprep.subr.bf16.mxu1 %v3354_v20 }
 0x46b   : > { %2891 = vmatpush3.bf16.msra.mxu1 %v3355_v21 }
 0x46e   : > { %2466 = vmatmul.mubr.bf16.vlgmr.msra.gmra.mrb[8].mxu1 %v4094_v35 }
 0x521   : > { %v2331_v23 = vpop.f32.mrb[4].mxu1 }
 0x522   : > { %v2916_v24 = vpop.f32.mrb[5].mxu1 }
 0x523   : > { %v2334_v25 = vpop.f32.mrb[6].mxu1 }
 0x524   : > { %v2917_v26 = vpop.f32.mrb[7].mxu1 }
 0x541   : > { %v2892_v27 = vpop.f32.mrb[8].mxu1 }
 0x542   : > { %v2893_v28 = vpop.f32.mrb[9].mxu1 }
 0x543   : > { %v2894_v29 = vadd.f32 %v2893_v28, %v2892_v27  ;;  %v2895_v14 = vpop.f32.mrb[10].mxu1 }
 0x544   : > { %v2896_v31 = vpop.f32.mrb[11].mxu1 }
 0x545   : > { %v2468_v32 = vadd.f32 %v2894_v29, %v2331_v23 }
 0x547   : > { %v2480_v33 = vadd.f32 %v2839_v30, %v2468_v32 }
 0x549   : > { %2482 = vst.msk [vmem:[%s4202_s9] sm:$0x3] %vm2481_vm5, %v2480_v33 }
 0x54a PF: > { %p26_p2 = scmp.ge.s32.totalorder %s3786_s30, 8   ;;  %s4221_s11 = smov %s3574_s12 }
 0x54b   : > { %s4222_s12 = smov %s3578_s13  ;;  %s4223_s13 = smov %s3798_s21 }
 0x54c   : > { %s4224_s14 = smov %s3786_s30  ;;  %28 = sbr.rel (!%p26_p2) target bundleno = 10 (0xa), region = 129 }
 0x553   :  { %2494 = vsyncpa [#allocation5], 1 }
 0x554   :  { %2496 = vsyncpa [#allocation5 + $0x1], 1 }
 0x555   :  { %2497 = vsyncpa [#allocation7], 1 }
 0x556   :  { %2499 = vsyncpa [#allocation7 + $0x1], 1 }
 0x557   :  { %2500 = vsyncpa [#allocation10], 1 }
 0x558   :  { %2501 = vsyncpa [#allocation13], 1 }

</bundles_post_ra>
